<compile_context>
chip_gen: v6e
topology: v6e:2x2x1
jax: 0.10.0
libtpu: 0.0.40
codegen_flags: <defaults>
</compile_context>

<pallas_src>
import jax
import jax.numpy as jnp
import numpy as np
from jax import lax
from jax.experimental import pallas as pl
from jax.experimental.pallas import tpu as pltpu


def _round_up(x, m):
    return ((x + m - 1) // m) * m


def make_sdnconv_kernel(TM, K, dk, dko, act_fn):
    Kdk = K * dk
    Kdko = K * dko

    DN_ROW = (((1,), (0,)), ((), ()))  # A[rows, :] @ F
    DN_COL = (((0,), (0,)), ((), ()))  # A[:, rows].T @ F (contract LHS dim 0)

    def kernel(ap_row_ref, ap_col_ref, an_row_ref, an_col_ref,
               f_ref, w_ref, b_ref, s_ref, out_ref):
        i = pl.program_id(0)

        F_all = f_ref[...]  # (N_pad, Kdk) bf16, resident across grid steps

        # Message aggregation (== torch.index_add) as dense bf16 MXU matmuls, f32 acc.
        m_p_out = lax.dot_general(ap_row_ref[...], F_all, DN_ROW,
                                  preferred_element_type=jnp.float32)
        m_p_in = lax.dot_general(ap_col_ref[...], F_all, DN_COL,
                                 preferred_element_type=jnp.float32)
        m_n_out = lax.dot_general(an_row_ref[...], F_all, DN_ROW,
                                  preferred_element_type=jnp.float32)
        m_n_in = lax.dot_general(an_col_ref[...], F_all, DN_COL,
                                 preferred_element_type=jnp.float32)

        # Self term: this tile's rows of the resident F.
        row0 = pl.multiple_of(i * TM, 8)
        f_self = f_ref[pl.ds(row0, TM), :].astype(jnp.float32)  # (TM, Kdk)

        # Per-factor FC (einsum 'ijk,jkl->ijl') as 5 lane-dense block-diagonal matmuls.
        msgs = (m_p_out, m_p_in, f_self, m_n_out, m_n_in)
        acc = None
        for s in range(5):
            w_s = w_ref[s * Kdk:(s + 1) * Kdk, :]          # static sublane slice
            part = jnp.dot(msgs[s], w_s, preferred_element_type=jnp.float32)
            acc = part if acc is None else acc + part
        acc = act_fn(acc + b_ref[...])                      # (TM, Kdko)

        # F.normalize over the factor axis K (eps = 1e-12):
        # factor-sum-and-broadcast via a tiny (Kdko, Kdko) matmul keeps lanes dense.
        sq = acc * acc
        ssum = jnp.dot(sq, s_ref[...], preferred_element_type=jnp.float32)  # (TM, Kdko)
        inv = lax.rsqrt(jnp.maximum(ssum, 1e-24))           # == 1 / max(||x||, 1e-12)
        out_ref[...] = (acc * inv).astype(out_ref.dtype)    # single full-width store

    return kernel


def sdnconv_forward(Ep, En, f_in, W, b, act_fn=jax.nn.relu, tm=128,
                    vmem_limit_bytes=48 * 1024 * 1024):
    """JAX/Pallas equivalent of SDNConv.forward(Ep, En, f_in)."""
    N, K, dk = f_in.shape
    K_w, five_dk, dko = W.shape
    assert K_w == K and five_dk == 5 * dk
    # The PyTorch module declares bias as (1, K, d_in//K); its forward only broadcasts
    # correctly when d_in//K == d_out//K.
    assert b.shape == (1, K, dko), "SDNConv bias requires d_in//K == d_out//K"

    Kdk, Kdko = K * dk, K * dko

    # Row-tile size: multiples of 128 keep the transposed (N_pad, TM) column blocks
    # lane-dense.  (On v7x keep TM at 128–256 for the 64 MiB VMEM; v5e/v6e can go larger.)
    if N <= tm:
        TM = max(8, _round_up(N, 8))       # single full-size tile
    else:
        assert tm % 128 == 0, "tm must be a multiple of 128 when tiling"
        TM = tm
    N_pad = _round_up(N, TM)
    grid = (N_pad // TM,)

    # Dense adjacency with edge multiplicity (== index_add), bf16, zero-padded rows/cols.
    Ap = jnp.zeros((N_pad, N_pad), jnp.float32).at[Ep[:, 0], Ep[:, 1]].add(1.0)
    An = jnp.zeros((N_pad, N_pad), jnp.float32).at[En[:, 0], En[:, 1]].add(1.0)
    Ap = Ap.astype(jnp.bfloat16)
    An = An.astype(jnp.bfloat16)

    F_flat = jnp.zeros((N_pad, Kdk), jnp.bfloat16).at[:N, :].set(
        f_in.reshape(N, Kdk).astype(jnp.bfloat16))

    # (K, 5*dk, dko) -> five block-diagonal (Kdk, Kdko) matrices stacked row-wise.
    Wf = W.astype(jnp.float32).reshape(K, 5, dk, dko).transpose(1, 0, 2, 3)  # (5,K,dk,dko)
    eyeK = jnp.eye(K, dtype=jnp.float32)
    W_big = jnp.einsum('ab,sakl->sakbl', eyeK, Wf).reshape(5 * Kdk, Kdko)

    b_flat = b.astype(jnp.float32).reshape(1, Kdko)

    # Factor-sum matrix: (sq @ S)[:, k*dko+j] = sum_k' sq[:, k'*dko + j].
    S = jnp.tile(jnp.eye(dko, dtype=jnp.float32), (K, K))  # (Kdko, Kdko)

    kernel = make_sdnconv_kernel(TM, K, dk, dko, act_fn)

    out_flat = pl.pallas_call(
        kernel,
        out_shape=jax.ShapeDtypeStruct((N_pad, Kdko), jnp.float32),
        grid=grid,
        in_specs=[
            pl.BlockSpec((TM, N_pad), lambda i: (i, 0)),       # Ap row block
            pl.BlockSpec((N_pad, TM), lambda i: (0, i)),       # Ap column block
            pl.BlockSpec((TM, N_pad), lambda i: (i, 0)),       # An row block
            pl.BlockSpec((N_pad, TM), lambda i: (0, i)),       # An column block
            pl.BlockSpec((N_pad, Kdk), lambda i: (0, 0)),      # F (resident)
            pl.BlockSpec((5 * Kdk, Kdko), lambda i: (0, 0)),   # block-diag weights
            pl.BlockSpec((1, Kdko), lambda i: (0, 0)),         # bias
            pl.BlockSpec((Kdko, Kdko), lambda i: (0, 0)),      # factor-sum matrix
        ],
        out_specs=pl.BlockSpec((TM, Kdko), lambda i: (i, 0)),
        compiler_params=pltpu.CompilerParams(
            dimension_semantics=("parallel",),
            vmem_limit_bytes=vmem_limit_bytes,
        ),
    )(Ap, Ap, An, An, F_flat, W_big, b_flat, S)

    return out_flat[:N, :].reshape(N, K, dko)


def sdnconv_reference(Ep, En, f_in, W, b, act_fn=jax.nn.relu):
    """Pure-JAX reference mirroring the PyTorch forward exactly (f32)."""
    zeros = jnp.zeros_like(f_in)
    m_p_out = zeros.at[Ep[:, 0]].add(f_in[Ep[:, 1]])
    m_p_in = zeros.at[Ep[:, 1]].add(f_in[Ep[:, 0]])
    m_n_out = zeros.at[En[:, 0]].add(f_in[En[:, 1]])
    m_n_in = zeros.at[En[:, 1]].add(f_in[En[:, 0]])
    m_concat = jnp.concatenate([m_p_out, m_p_in, f_in, m_n_out, m_n_in], axis=2)
    f_out = jnp.einsum('ijk,jkl->ijl', m_concat, W) + b
    f_out = act_fn(f_out)
    nrm = jnp.maximum(jnp.sqrt(jnp.sum(f_out ** 2, axis=1, keepdims=True)), 1e-12)
    return f_out / nrm


if __name__ == "__main__":
    # Small but multi-tile shapes (N > 128 exercises the row-tiled grid).
    N = 200           # number of nodes
    K = 4             # number of factors
    d_in = 32         # input embedding dim
    d_out = 32        # output embedding dim (module requires d_in//K == d_out//K)
    dk = d_in // K
    dko = d_out // K
    Mp, Mn = 600, 450  # positive / negative edge counts

    key = jax.random.PRNGKey(0)
    k_ep, k_en, k_f, k_w = jax.random.split(key, 4)

    Ep = jax.random.randint(k_ep, (Mp, 2), 0, N, dtype=jnp.int32)
    En = jax.random.randint(k_en, (Mn, 2), 0, N, dtype=jnp.int32)
    f_in = jax.random.normal(k_f, (N, K, dk), dtype=jnp.float32)

    # Parameters mirroring setup_layers (xavier_uniform_ weights, zero bias).
    fan_in, fan_out = 5 * dk * dko, K * dko
    bound = float(np.sqrt(6.0 / (fan_in + fan_out)))
    W = jax.random.uniform(k_w, (K, 5 * dk, dko), jnp.float32, -bound, bound)
    b = jnp.zeros((1, K, d_in // K), jnp.float32)

    act_fn = jax.nn.relu

    out = sdnconv_forward(Ep, En, f_in, W, b, act_fn)
    out = jax.block_until_ready(out)

    ref = jax.block_until_ready(sdnconv_reference(Ep, En, f_in, W, b, act_fn))
    assert out.shape == (N, K, dko)
    np.testing.assert_allclose(np.asarray(out), np.asarray(ref), rtol=2e-2, atol=2e-2)

    print("KERNEL_OK")
</pallas_src>

<mosaic_0001>
module attributes {stable_mosaic.version = 11 : i64} {
  func.func @kernel(%arg0: i32, %arg1: memref<128x256xbf16, #tpu.memory_space<vmem>>, %arg2: memref<256x128xbf16, #tpu.memory_space<vmem>>, %arg3: memref<128x256xbf16, #tpu.memory_space<vmem>>, %arg4: memref<256x128xbf16, #tpu.memory_space<vmem>>, %arg5: memref<256x32xbf16, #tpu.memory_space<vmem>>, %arg6: memref<160x32xf32, #tpu.memory_space<vmem>>, %arg7: memref<1x32xf32, #tpu.memory_space<vmem>>, %arg8: memref<32x32xf32, #tpu.memory_space<vmem>>, %arg9: memref<128x32xf32, #tpu.memory_space<vmem>>) attributes {dimension_semantics = [#tpu.dimension_semantics<parallel>], iteration_bounds = array<i64: 2>, scalar_prefetch = 0 : i64, scratch_operands = 0 : i64, tpu.core_type = #tpu.core_type<tc>, window_params = [{transform_indices = @transform_0, window_bounds = array<i64: 128, 256>}, {transform_indices = @transform_1, window_bounds = array<i64: 256, 128>}, {transform_indices = @transform_2, window_bounds = array<i64: 128, 256>}, {transform_indices = @transform_3, window_bounds = array<i64: 256, 128>}, {pipeline_mode = #tpu.pipeline_mode<synchronous>, transform_indices = @transform_4, window_bounds = array<i64: 256, 32>}, {pipeline_mode = #tpu.pipeline_mode<synchronous>, transform_indices = @transform_5, window_bounds = array<i64: 160, 32>}, {pipeline_mode = #tpu.pipeline_mode<synchronous>, transform_indices = @transform_6, window_bounds = array<i64: 1, 32>}, {pipeline_mode = #tpu.pipeline_mode<synchronous>, transform_indices = @transform_7, window_bounds = array<i64: 32, 32>}, {transform_indices = @transform_8, window_bounds = array<i64: 128, 32>}]} {
    %c0 = arith.constant 0 : index
    %c0_0 = arith.constant 0 : index
    %0 = vector.load %arg5[%c0, %c0_0] : memref<256x32xbf16, #tpu.memory_space<vmem>>, vector<256x32xbf16>
    %c0_1 = arith.constant 0 : index
    %c0_2 = arith.constant 0 : index
    %1 = vector.load %arg1[%c0_1, %c0_2] : memref<128x256xbf16, #tpu.memory_space<vmem>>, vector<128x256xbf16>
    %cst = arith.constant dense<0.000000e+00> : vector<128x32xf32>
    %2 = tpu.matmul %1, %0, %cst {dimension_numbers = #tpu.dot_dimension_numbers<[1], [0], [0], [1], [0, 0, 1, 1], [], []>} : vector<128x256xbf16>, vector<256x32xbf16>, vector<128x32xf32> -> vector<128x32xf32>
    %c0_3 = arith.constant 0 : index
    %c0_4 = arith.constant 0 : index
    %3 = vector.load %arg2[%c0_3, %c0_4] : memref<256x128xbf16, #tpu.memory_space<vmem>>, vector<256x128xbf16>
    %cst_5 = arith.constant dense<0.000000e+00> : vector<128x32xf32>
    %4 = tpu.matmul %3, %0, %cst_5 {dimension_numbers = #tpu.dot_dimension_numbers<[0], [0], [1], [1], [0, 1, 1, 1], [], []>} : vector<256x128xbf16>, vector<256x32xbf16>, vector<128x32xf32> -> vector<128x32xf32>
    %c0_6 = arith.constant 0 : index
    %c0_7 = arith.constant 0 : index
    %5 = vector.load %arg3[%c0_6, %c0_7] : memref<128x256xbf16, #tpu.memory_space<vmem>>, vector<128x256xbf16>
    %cst_8 = arith.constant dense<0.000000e+00> : vector<128x32xf32>
    %6 = tpu.matmul %5, %0, %cst_8 {dimension_numbers = #tpu.dot_dimension_numbers<[1], [0], [0], [1], [0, 0, 1, 1], [], []>} : vector<128x256xbf16>, vector<256x32xbf16>, vector<128x32xf32> -> vector<128x32xf32>
    %c0_9 = arith.constant 0 : index
    %c0_10 = arith.constant 0 : index
    %7 = vector.load %arg4[%c0_9, %c0_10] : memref<256x128xbf16, #tpu.memory_space<vmem>>, vector<256x128xbf16>
    %cst_11 = arith.constant dense<0.000000e+00> : vector<128x32xf32>
    %8 = tpu.matmul %7, %0, %cst_11 {dimension_numbers = #tpu.dot_dimension_numbers<[0], [0], [1], [1], [0, 1, 1, 1], [], []>} : vector<256x128xbf16>, vector<256x32xbf16>, vector<128x32xf32> -> vector<128x32xf32>
    %c128_i32 = arith.constant 128 : i32
    %9 = arith.muli %arg0, %c128_i32 : i32
    %10 = tpu.assume_multiple %9, 8 : i32
    %11 = arith.index_cast %10 : i32 to index
    %c0_12 = arith.constant 0 : index
    %12 = vector.load %arg5[%11, %c0_12] : memref<256x32xbf16, #tpu.memory_space<vmem>>, vector<128x32xbf16>
    %13 = arith.extf %12 : vector<128x32xbf16> to vector<128x32xf32>
    %c0_13 = arith.constant 0 : index
    %c0_14 = arith.constant 0 : index
    %14 = vector.load %arg6[%c0_13, %c0_14] : memref<160x32xf32, #tpu.memory_space<vmem>>, vector<32x32xf32>
    %cst_15 = arith.constant dense<0.000000e+00> : vector<128x32xf32>
    %15 = tpu.matmul %2, %14, %cst_15 {dimension_numbers = #tpu.dot_dimension_numbers<[1], [0], [0], [1], [0, 0, 1, 1], [], []>} : vector<128x32xf32>, vector<32x32xf32>, vector<128x32xf32> -> vector<128x32xf32>
    %c32 = arith.constant 32 : index
    %c0_16 = arith.constant 0 : index
    %16 = vector.load %arg6[%c32, %c0_16] : memref<160x32xf32, #tpu.memory_space<vmem>>, vector<32x32xf32>
    %cst_17 = arith.constant dense<0.000000e+00> : vector<128x32xf32>
    %17 = tpu.matmul %4, %16, %cst_17 {dimension_numbers = #tpu.dot_dimension_numbers<[1], [0], [0], [1], [0, 0, 1, 1], [], []>} : vector<128x32xf32>, vector<32x32xf32>, vector<128x32xf32> -> vector<128x32xf32>
    %18 = arith.addf %15, %17 : vector<128x32xf32>
    %c64 = arith.constant 64 : index
    %c0_18 = arith.constant 0 : index
    %19 = vector.load %arg6[%c64, %c0_18] : memref<160x32xf32, #tpu.memory_space<vmem>>, vector<32x32xf32>
    %cst_19 = arith.constant dense<0.000000e+00> : vector<128x32xf32>
    %20 = tpu.matmul %13, %19, %cst_19 {dimension_numbers = #tpu.dot_dimension_numbers<[1], [0], [0], [1], [0, 0, 1, 1], [], []>} : vector<128x32xf32>, vector<32x32xf32>, vector<128x32xf32> -> vector<128x32xf32>
    %21 = arith.addf %18, %20 : vector<128x32xf32>
    %c96 = arith.constant 96 : index
    %c0_20 = arith.constant 0 : index
    %22 = vector.load %arg6[%c96, %c0_20] : memref<160x32xf32, #tpu.memory_space<vmem>>, vector<32x32xf32>
    %cst_21 = arith.constant dense<0.000000e+00> : vector<128x32xf32>
    %23 = tpu.matmul %6, %22, %cst_21 {dimension_numbers = #tpu.dot_dimension_numbers<[1], [0], [0], [1], [0, 0, 1, 1], [], []>} : vector<128x32xf32>, vector<32x32xf32>, vector<128x32xf32> -> vector<128x32xf32>
    %24 = arith.addf %21, %23 : vector<128x32xf32>
    %c128 = arith.constant 128 : index
    %c0_22 = arith.constant 0 : index
    %25 = vector.load %arg6[%c128, %c0_22] : memref<160x32xf32, #tpu.memory_space<vmem>>, vector<32x32xf32>
    %cst_23 = arith.constant dense<0.000000e+00> : vector<128x32xf32>
    %26 = tpu.matmul %8, %25, %cst_23 {dimension_numbers = #tpu.dot_dimension_numbers<[1], [0], [0], [1], [0, 0, 1, 1], [], []>} : vector<128x32xf32>, vector<32x32xf32>, vector<128x32xf32> -> vector<128x32xf32>
    %27 = arith.addf %24, %26 : vector<128x32xf32>
    %c0_24 = arith.constant 0 : index
    %c0_25 = arith.constant 0 : index
    %28 = vector.load %arg7[%c0_24, %c0_25] : memref<1x32xf32, #tpu.memory_space<vmem>>, vector<1x32xf32>
    %29 = vector.broadcast %28 : vector<1x32xf32> to vector<128x32xf32>
    %30 = arith.addf %27, %29 : vector<128x32xf32>
    %cst_26 = arith.constant 0.000000e+00 : f32
    %31 = vector.broadcast %cst_26 : f32 to vector<128x32xf32>
    %32 = arith.maximumf %30, %31 : vector<128x32xf32>
    %33 = arith.mulf %32, %32 : vector<128x32xf32>
    %c0_27 = arith.constant 0 : index
    %c0_28 = arith.constant 0 : index
    %34 = vector.load %arg8[%c0_27, %c0_28] : memref<32x32xf32, #tpu.memory_space<vmem>>, vector<32x32xf32>
    %cst_29 = arith.constant dense<0.000000e+00> : vector<128x32xf32>
    %35 = tpu.matmul %33, %34, %cst_29 {dimension_numbers = #tpu.dot_dimension_numbers<[1], [0], [0], [1], [0, 0, 1, 1], [], []>} : vector<128x32xf32>, vector<32x32xf32>, vector<128x32xf32> -> vector<128x32xf32>
    %cst_30 = arith.constant 1.000000e-24 : f32
    %36 = vector.broadcast %cst_30 : f32 to vector<128x32xf32>
    %37 = arith.maximumf %35, %36 : vector<128x32xf32>
    %38 = math.rsqrt %37 : vector<128x32xf32>
    %39 = arith.mulf %32, %38 : vector<128x32xf32>
    %c0_31 = arith.constant 0 : index
    %c0_32 = arith.constant 0 : index
    %40 = vector.load %arg9[%c0_31, %c0_32] : memref<128x32xf32, #tpu.memory_space<vmem>>, vector<128x32xf32>
    tpu.vector_store %arg9[%c0_31, %c0_32], %39 {strides = array<i32>} : memref<128x32xf32, #tpu.memory_space<vmem>>, vector<128x32xf32>,
    return
  }
  func.func @transform_0(%arg0: i32) -> (i32, i32) {
    %c0_i32 = arith.constant 0 : i32
    %c0_i32_0 = arith.constant 0 : i32
    return %arg0, %c0_i32 : i32, i32
  }
  func.func @transform_1(%arg0: i32) -> (i32, i32) {
    %c0_i32 = arith.constant 0 : i32
    %c0_i32_0 = arith.constant 0 : i32
    return %c0_i32, %arg0 : i32, i32
  }
  func.func @transform_2(%arg0: i32) -> (i32, i32) {
    %c0_i32 = arith.constant 0 : i32
    %c0_i32_0 = arith.constant 0 : i32
    return %arg0, %c0_i32 : i32, i32
  }
  func.func @transform_3(%arg0: i32) -> (i32, i32) {
    %c0_i32 = arith.constant 0 : i32
    %c0_i32_0 = arith.constant 0 : i32
    return %c0_i32, %arg0 : i32, i32
  }
  func.func @transform_4(%arg0: i32) -> (i32, i32) {
    %c0_i32 = arith.constant 0 : i32
    %c0_i32_0 = arith.constant 0 : i32
    %c0_i32_1 = arith.constant 0 : i32
    return %c0_i32, %c0_i32_0 : i32, i32
  }
  func.func @transform_5(%arg0: i32) -> (i32, i32) {
    %c0_i32 = arith.constant 0 : i32
    %c0_i32_0 = arith.constant 0 : i32
    %c0_i32_1 = arith.constant 0 : i32
    return %c0_i32, %c0_i32_0 : i32, i32
  }
  func.func @transform_6(%arg0: i32) -> (i32, i32) {
    %c0_i32 = arith.constant 0 : i32
    %c0_i32_0 = arith.constant 0 : i32
    %c0_i32_1 = arith.constant 0 : i32
    return %c0_i32, %c0_i32_0 : i32, i32
  }
  func.func @transform_7(%arg0: i32) -> (i32, i32) {
    %c0_i32 = arith.constant 0 : i32
    %c0_i32_0 = arith.constant 0 : i32
    %c0_i32_1 = arith.constant 0 : i32
    return %c0_i32, %c0_i32_0 : i32, i32
  }
  func.func @transform_8(%arg0: i32) -> (i32, i32) {
    %c0_i32 = arith.constant 0 : i32
    %c0_i32_0 = arith.constant 0 : i32
    return %arg0, %c0_i32 : i32, i32
  }
}

</mosaic_0001>

<bundles_post_ra>
// kernel: tpu_custom_call.1
= control target key start
LH: loop header
LB: loop body
LE: loop exit
PB: predicated region body
PF: predicated region fallthrough
CT: control target
= control target key end

     0   :  { %s4979_s0 = inlined_call_operand.vmem [shape: bf16[256,256], index: 0, kind: input, shape index: {}]   ;;  %s4980_s1 = inlined_call_operand.hbm [shape: bf16[256,256], index: 1, kind: input, shape index: {}]   ;;  %s4981_s2 = inlined_call_operand.hbm [shape: bf16[256,256], index: 2, kind: input, shape index: {}]   ;;  %s4982_s3 = inlined_call_operand.hbm [shape: bf16[256,256], index: 3, kind: input, shape index: {}]   ;;  %s4983_s4 = inlined_call_operand.vmem [shape: bf16[256,32], index: 4, kind: input, shape index: {}]   ;;  %s4984_s5 = inlined_call_operand.vmem [shape: f32[160,32], index: 5, kind: input, shape index: {}]   ;;  %s4985_s6 = inlined_call_operand.vmem [shape: f32[1,32], index: 6, kind: input, shape index: {}]   ;;  %s4986_s7 = inlined_call_operand.vmem [shape: f32[32,32], index: 7, kind: input, shape index: {}]   ;;  %s4987_s8 = inlined_call_operand.vmem [shape: f32[256,32], index: 8, kind: output, shape index: {}]  }
   0x1   :  { %4994 = sst [smem:[#allocation15_spill]] %s4980_s1 }
   0x2   :  { %4995 = sst [smem:[#allocation16_spill]] %s4981_s2 }
   0x3   :  { %4996 = sst [smem:[#allocation17_spill]] %s4987_s8 }
   0x4   :  { %13 = vsyncpa [#allocation3], 0 }
   0x5   :  { %15 = vsyncpa [#allocation3 + $0x1], 0 }
   0x6   :  { %16 = vsyncpa [#allocation5], 0 }
   0x7   :  { %18 = vsyncpa [#allocation5 + $0x1], 0  ;;  %s4138_s27 = smov 0   ;;  %s4140_s28 = smov 0  }
   0x8   :  { %s4142_s29 = smov 0   ;;  %s4144_s30 = smov 0  }
   0x9 LB: > { %4997 = sst [smem:[#allocation9_spill]] %s4080_s29  ;;  %s4157_s9 = sadd.s32 4294967295, %s4084_s30   ;;  %s4084_s30 = sphi %s4144_s30, %s5017_s30   ;;  %s4080_s29 = sphi %s4142_s29, %s5019_s29   ;;  %s4076_s28 = sphi %s4140_s28, %s5021_s28   ;;  %s4072_s27 = sphi %s4138_s27, %s5020_s27  }
   0xa   : > { %s4160_s10 = sadd.s32 1, %s4084_s30   ;;  %s57_s12 = sadd.s32 1, %s4080_s29 }
   0xb   : > { %4998 = sst [smem:[#allocation10_spill]] %s4160_s10  ;;  %s54_s11 = ssub.s32 %s4084_s30, %s4160_s10 }
   0xc   : > { %p55_p0 = scmp.eq.s32.totalorder %s54_s11, 0  ;;  %p64_p1 = scmp.ne.s32.totalorder %s4080_s29, %s4076_s28 }
   0xd   : > { %p65_p2 = scmp.eq.s32.totalorder %s4084_s30, 0  ;;  %p70_p3 = scmp.ne.s32.totalorder %s4076_s28, %s4072_s27 }
   0xe   : > { %s4170_s13 = scalar_select %p55_p0, %s4080_s29, %s57_s12  }
   0xf   : > { %p66_p4 = por %p65_p2, %p64_p1  ;;  %p71_p5 = scmp.eq.s32.totalorder %s4157_s9, 0 }
  0x10   : > { %4999 = sst [smem:[#allocation11_spill]] %s4170_s13  ;;  %p3797_p6 = scmp.lt.s32.totalorder %s4084_s30, 2 }
  0x11   : > { %p4174_p7 = por %p71_p5, %p70_p3  ;;  %s4989_s15 = sand.u32 1, %s4080_s29  }
  0x12   : > { %s4181_s16 = sshll.u32 %s4989_s15, 7  ;;  %p4183_p8 = pnand %p3797_p6, %p66_p4 }
  0x13   : > { %s5000_s14 = scalar_select %p4174_p7, 1, 0 }
  0x14   : > { %s298_s18 = sand.u32 1, %s4084_s30   ;;  %s3172_s19 = sshll.u32 %s4084_s30, 11 }
  0x15   : > { %s5002_s2 = sld [smem:[#allocation16_spill]]  ;;  %s302_s23 = scalar_lea.vmem [#allocation4], %s4181_s16 }
  0x16   : > { %s310_s24 = sshll.u32 %s302_s23, 4  ;;  %s4197_s25 = scalar_lea.sflag [#allocation5], %s298_s18  ;;  %s4195_s24 = int_to_ptr.vmem [resolvable:$true] %s310_s24 }
  0x17   : > { %p4203_p10 = pneg %p4183_p8 }
  0x1b   : > { %s4192_s22 = scalar_lea.hbm %s5002_s2, %s3172_s19  ;;  %s3967_s19 = scalar_lea.hbm %s5002_s2, 4096 }
  0x1c   : > { %s3962_s26 = scalar_lea.hbm %s4192_s22, 2048  ;;  %p3968_p13 = scmp.lt.s32.totalorder %s4192_s22, %s5002_s2 }
  0x1d   : > { %p3963_p9 = scmp.ne.s32.totalorder %s4192_s22, %s3962_s26  ;;  %p3969_p0 = scmp.lt.s32.totalorder %s3967_s19, %s3962_s26 }
  0x1f   : > { %p3965_p11 = pnand %p4203_p10, %p3963_p9  ;;  %p3970_p1 = por %p3969_p0, %p3968_p13 }
  0x21   : > { %p3966_p12 = pneg %p3965_p11 }
  0x23   : > { %p3971_p2 = pnand %p3970_p1, %p3966_p12 }
  0x25   : > { %3974 = shalt.err (!%p3971_p2)
}
  0x26   : > { %s3975_s18 = scalar_lea.vmem %s4195_s24, 2048  ;;  %s4086_s23 = smov [#allocation4]  }
  0x27   : > { %p3976_p3 = scmp.ne.s32.totalorder %s4195_s24, %s3975_s18  ;;  %s3980_s11 = sshll.u32 %s4086_s23, 4  ;;  %s3981_s11 = int_to_ptr.vmem [resolvable:$false] %s3980_s11 }
  0x28   : > { %s3982_s12 = scalar_lea.vmem %s3981_s11, 4096  ;;  %p3983_p6 = scmp.lt.s32.totalorder %s4195_s24, %s3981_s11 }
  0x29   : > { %p3978_p4 = pnand %p3976_p3, %p4203_p10  ;;  %p3984_p9 = scmp.lt.s32.totalorder %s3982_s12, %s3975_s18 }
  0x2b   : > { %p3979_p5 = pneg %p3978_p4  ;;  %p3985_p11 = por %p3984_p9, %p3983_p6 }
  0x2d   : > { %p3986_p7 = pnand %p3985_p11, %p3979_p5 }
  0x2f   : > { %3989 = shalt.err (!%p3986_p7)
}
  0x30   : > { %s4087_s26 = smov 128   ;;  %s4088_s19 = smov 8  }
  0x31   : > { %3793 = dma.hbm_to_vmem [thread:$0]  (!%p4183_p8), %s4192_s22, 2048, %s4195_s24, %s4197_s25, %s4087_s26, %s4087_s26, %s4088_s19  }
  0x32   : > { %p2981_p12 = scmp.ge.s32.totalorder %s4084_s30, 1  ;;  %s324_s20 = scalar_lea.vmem [#allocation6], %s4181_s16 }
  0x33   : > { %s330_s21 = sshll.u32 %s324_s20, 4  ;;  %p338_p7 = scmp.lt.s32.totalorder %s4084_s30, 3  ;;  %s4231_s21 = int_to_ptr.vmem [resolvable:$true] %s330_s21 }
  0x34   : > { %s4990_s23 = sshll.u32 %s4084_s30, 6  ;;  %s282_s11 = scalar_lea.vmem [#allocation2], %s4181_s16 }
  0x35   : > { %p4233_p13 = pnand %p2981_p12, %p338_p7  ;;  %s288_s12 = sshll.u32 %s282_s11, 4  ;;  %s4246_s12 = int_to_ptr.vmem [resolvable:$true] %s288_s12 }
  0x36   : > { %s5005_s1 = sld [smem:[#allocation15_spill]]  ;;  %s5006_s22 = sand.u32 1, %s4080_s29  }
  0x37   : > { %s5004_s18 = scalar_select %p4233_p13, 1, 0 }
  0x38   : > { %s4250_s24 = scalar_lea.sflag [#allocation3], %s5006_s22 }
  0x3c   : > { %s4244_s13 = scalar_lea.hbm %s5005_s1, %s4990_s23  ;;  %s3995_s11 = scalar_lea.hbm %s5005_s1, 4096 }
  0x3d   : > { %s3990_s19 = scalar_lea.hbm %s4244_s13, 2048  ;;  %p3996_p3 = scmp.lt.s32.totalorder %s4244_s13, %s5005_s1 }
  0x3e   : > { %p3991_p0 = scmp.ne.s32.totalorder %s4244_s13, %s3990_s19  ;;  %p3997_p4 = scmp.lt.s32.totalorder %s3995_s11, %s3990_s19 }
  0x40   : > { %p3993_p1 = pnand %p3991_p0, %p4203_p10  ;;  %p3998_p5 = por %p3997_p4, %p3996_p3 }
  0x42   : > { %p3994_p2 = pneg %p3993_p1 }
  0x44   : > { %p3999_p6 = pnand %p3998_p5, %p3994_p2 }
  0x46   : > { %4002 = shalt.err (!%p3999_p6)
}
  0x47   : > { %s4003_s22 = scalar_lea.vmem %s4246_s12, 2048  ;;  %s4089_s23 = smov [#allocation2]  }
  0x48   : > { %p4004_p9 = scmp.ne.s32.totalorder %s4246_s12, %s4003_s22  ;;  %s4008_s16 = sshll.u32 %s4089_s23, 4  ;;  %s4009_s16 = int_to_ptr.vmem [resolvable:$false] %s4008_s16 }
  0x49   : > { %s4010_s20 = scalar_lea.vmem %s4009_s16, 4096  ;;  %p4011_p7 = scmp.lt.s32.totalorder %s4246_s12, %s4009_s16 }
  0x4a   : > { %p4006_p11 = pnand %p4004_p9, %p4203_p10  ;;  %p4012_p0 = scmp.lt.s32.totalorder %s4010_s20, %s4003_s22 }
  0x4c   : > { %p4007_p12 = pneg %p4006_p11  ;;  %p4013_p1 = por %p4012_p0, %p4011_p7 }
  0x4e   : > { %p4014_p13 = pnand %p4013_p1, %p4007_p12 }
  0x50   : > { %4017 = shalt.err (!%p4014_p13)
}
  0x51   : > { %s4090_s19 = smov 64   ;;  %s4091_s11 = smov 4  }
  0x52   : > { %3790 = dma.hbm_to_vmem [thread:$0]  (!%p4183_p8), %s4244_s13, 2048, %s4246_s12, %s4250_s24, %s4087_s26, %s4090_s19, %s4091_s11  }
  0x53   : > { %s5007_s23 = sshll.u32 %s4084_s30, 6  ;;  %s4023_s29 = scalar_lea.hbm %s4982_s3, 4096 }
  0x54   : > { %s329_s22 = scalar_lea.hbm %s4982_s3, %s5007_s23 }
  0x55   : > { %s4018_s16 = scalar_lea.hbm %s329_s22, 2048  ;;  %p4024_p4 = scmp.lt.s32.totalorder %s329_s22, %s4982_s3 }
  0x56   : > { %p4019_p13 = scmp.ne.s32.totalorder %s329_s22, %s4018_s16  ;;  %p4025_p5 = scmp.lt.s32.totalorder %s4023_s29, %s4018_s16 }
  0x58   : > { %p4021_p2 = pnand %p4019_p13, %p4203_p10  ;;  %p4026_p6 = por %p4025_p5, %p4024_p4 }
  0x5a   : > { %p4022_p3 = pneg %p4021_p2 }
  0x5c   : > { %p4027_p9 = pnand %p4026_p6, %p4022_p3 }
  0x5e   : > { %4030 = shalt.err (!%p4027_p9)
}
  0x5f   : > { %s4031_s30 = scalar_lea.vmem %s4231_s21, 2048  ;;  %s4092_s13 = smov [#allocation6]  }
  0x60   : > { %p4032_p11 = scmp.ne.s32.totalorder %s4231_s21, %s4031_s30  ;;  %s4036_s1 = sshll.u32 %s4092_s13, 4  ;;  %s4037_s1 = int_to_ptr.vmem [resolvable:$false] %s4036_s1 }
  0x61   : > { %s4038_s12 = scalar_lea.vmem %s4037_s1, 4096  ;;  %p4039_p0 = scmp.lt.s32.totalorder %s4231_s21, %s4037_s1 }
  0x62   : > { %p4034_p12 = pnand %p4032_p11, %p4203_p10  ;;  %p4040_p1 = scmp.lt.s32.totalorder %s4038_s12, %s4031_s30 }
  0x64   : > { %p4035_p7 = pneg %p4034_p12  ;;  %p4041_p13 = por %p4040_p1, %p4039_p0 }
  0x66   : > { %p4042_p2 = pnand %p4041_p13, %p4035_p7 }
  0x68   : > { %4045 = shalt.err (!%p4042_p2)
}
  0x69   : > { %3796 = dma.hbm_to_vmem [thread:$0]  (!%p4183_p8), %s329_s22, 2048, %s4231_s21, %s4197_s25, %s4087_s26, %s4090_s19, %s4091_s11  }
  0x6a   : > { %p5008_p10 = scmp.ne.s32.totalorder %s5004_s18, 0 }
  0x6c   : > { %342 = sbr.rel (%p5008_p10) target bundleno = 960 (0x3c0), region = 52 }
  0x71   : > { %s344_s8 = sand.u32 1, %s4076_s28   ;;  %p5009_p3 = scmp.ne.s32.totalorder %s5000_s14, 0 }
  0x72   : > { %s4304_s29 = sshll.u32 %s344_s8, 7  ;;  %s345_s10 = scalar_lea.sflag [#allocation3], %s344_s8 }
  0x73   : > { %s4307_s27 = scalar_lea.vmem [#allocation2], %s4304_s29 }
  0x74   : > { %4063 = dma.done.wait (%p5009_p3), %s345_s10, 2048  }
  0x75   : > { %4065 = vsyncadd (%p5009_p3), %s345_s10, 4294965248  ;;  %s353_s17 = sand.u32 1, %s4157_s9   ;;  %s4315_s26 = scalar_lea.vmem [#allocation4], %s4304_s29 }
  0x76   : > { %s354_s25 = scalar_lea.sflag [#allocation5], %s353_s17 }
  0x77   : > { %4067 = dma.done.wait (%p5009_p3), %s354_s25, 4096  }
  0x78   : > { %4069 = vsyncadd (%p5009_p3), %s354_s25, 4294963200  ;;  %v3834_v0 = vld [vmem:[%s4307_s27 + $0x40] sm:$0xff]   ;;  %v3836_v2 = vld [vmem:[%s4307_s27 + $0x48] sm:$0xff]   ;;  %s2985_s16 = sshll.u32 %s4157_s9, 4  ;;  %s4404_s14 = scalar_lea.vmem [#allocation6], %s4304_s29  ;;  %vm1503_vm0 = vcmask 261120  }
  0x79   : > { %v3835_v1 = vld [vmem:[%s4307_s27] sm:$0xff]   ;;  %895 = vxpose.xlu0.c.b16.start [1/8] %v3834_v0, 128  ;;  %v3837_v3 = vld [vmem:[%s4307_s27 + $0x8] sm:$0xff]   ;;  %v3838_v4 = vld [vmem:[%s4307_s27 + $0x50] sm:$0xff]   ;;  %p416_p8 = scmp.lt.s32.totalorder %s2985_s16, 31  ;;  %s3070_s22 = sshll.u32 %s4157_s9, 7 }
  0x7a   : > { %879 = vxpose.xlu1.c.b16.start [1/8] %v3835_v1, 128  ;;  %v3839_v5 = vld [vmem:[%s4307_s27 + $0x10] sm:$0xff]   ;;  %v3840_v6 = vld [vmem:[%s4307_s27 + $0x58] sm:$0xff]   ;;  %v3842_v8 = vld [vmem:[%s4307_s27 + $0x60] sm:$0xff]  }
  0x7b   : > { %v3841_v7 = vld [vmem:[%s4307_s27 + $0x18] sm:$0xff]   ;;  %v3843_v9 = vld [vmem:[%s4307_s27 + $0x20] sm:$0xff]   ;;  %v3844_v10 = vld [vmem:[%s4307_s27 + $0x68] sm:$0xff]   ;;  %s5023_s16 = smov (!%p416_p8, %s2985_s16), 31 }
  0x7c   : > { %v4335_v11 = vld [vmem:[%s4983_s4 + $0x78] sm:$0xff]   ;;  %v3845_v12 = vld [vmem:[%s4307_s27 + $0x28] sm:$0xff]   ;;  %v4347_v14 = vld [vmem:[%s4983_s4 + $0x70] sm:$0xff]   ;;  %s3173_s21 = sshll.u32 %s5023_s16, 3 }
  0x7d   : > { %896 = vxpose.xlu0.c.b16.cont [2/8] %v3836_v2, 128  ;;  %v4341_v13 = vld [vmem:[%s4983_s4 + $0x38] sm:$0xff]   ;;  %3213 = vmatprep.subr.bf16.mxu0 %v4335_v11  ;;  %v4353_v15 = vld [vmem:[%s4983_s4 + $0x30] sm:$0xff]   ;;  %v4359_v16 = vld [vmem:[%s4983_s4 + $0x68] sm:$0xff]   ;;  %s4429_s2 = scalar_lea.vmem %s4979_s0, %s3173_s21 }
  0x7e   : > { %880 = vxpose.xlu1.c.b16.cont [2/8] %v3837_v3, 128  ;;  %3214 = vmatpush3.bf16.msra.mxu0 %v4341_v13  ;;  %v3846_v17 = vld [vmem:[%s4307_s27 + $0x70] sm:$0xff]   ;;  %v4371_v19 = vld [vmem:[%s4983_s4 + $0x28] sm:$0xff]   ;;  %v4377_v20 = vld [vmem:[%s4983_s4 + $0x60] sm:$0xff]  }
  0x7f   : > { %3215 = vmatprep.subr.bf16.mxu0 %v4347_v14  ;;  %3277 = vmatprep.subr.bf16.mxu1 %v4335_v11  ;;  %v3847_v18 = vld [vmem:[%s4307_s27 + $0x30] sm:$0xff]   ;;  %v3848_v21 = vld [vmem:[%s4307_s27 + $0x78] sm:$0xff]   ;;  %v4387_v23 = vld [vmem:[%s4983_s4 + $0x20] sm:$0xff]  }
  0x80   : > { %3278 = vmatpush3.bf16.msra.mxu1 %v4341_v13  ;;  %v3849_v22 = vld [vmem:[%s4307_s27 + $0x38] sm:$0xff]   ;;  %v3864_v26 = vld [vmem:[%s4404_s14 + $0x40] sm:$0xff]   ;;  %v4415_v28 = vld [vmem:[%s4983_s4 + $0x50] sm:$0xff]  }
  0x81   : > { %897 = vxpose.xlu0.c.b16.cont [3/8] %v3838_v4, 128  ;;  %3279 = vmatprep.subr.bf16.mxu1 %v4347_v14  ;;  %v4395_v24 = vld [vmem:[%s4983_s4 + $0x58] sm:$0xff]   ;;  %v3865_v27 = vld [vmem:[%s4404_s14] sm:$0xff]   ;;  %v4420_v29 = vld [vmem:[%s4983_s4 + $0x10] sm:$0xff]  }
  0x82   : > { %881 = vxpose.xlu1.c.b16.cont [3/8] %v3839_v5, 128  ;;  %3216 = vmatpush3.bf16.msra.mxu0 %v4353_v15  ;;  %v4400_v25 = vld [vmem:[%s4983_s4 + $0x18] sm:$0xff]   ;;  %v3868_v30 = vld [vmem:[%s4404_s14 + $0x48] sm:$0xff]   ;;  %v3873_v35 = vld [vmem:[%s4404_s14 + $0x50] sm:$0xff]  }
  0x83   : > { %3217 = vmatprep.subr.bf16.mxu0 %v4359_v16  ;;  %v3869_v31 = vld [vmem:[%s4404_s14 + $0x8] sm:$0xff]   ;;  %v3874_v36 = vld [vmem:[%s4404_s14 + $0x10] sm:$0xff]   ;;  %v4455_v37 = vld [vmem:[%s4983_s4 + $0x40] sm:$0xff]  }
  0x84   : > { %3280 = vmatpush3.bf16.msra.mxu1 %v4353_v15  ;;  %v4438_v32 = vld [vmem:[%s4983_s4 + $0x48] sm:$0xff]   ;;  %v4461_v38 = vld [vmem:[%s4983_s4] sm:$0xff]   ;;  %v3875_v39 = vld [vmem:[%s4404_s14 + $0x58] sm:$0xff]  }
  0x85   : > { %898 = vxpose.xlu0.c.b16.cont [4/8] %v3840_v6, 128  ;;  %3281 = vmatprep.subr.bf16.mxu1 %v4359_v16  ;;  %v4443_v33 = vld [vmem:[%s4983_s4 + $0x8] sm:$0xff]   ;;  %v3876_v40 = vld [vmem:[%s4404_s14 + $0x18] sm:$0xff]   ;;  %v3880_v42 = vld [vmem:[%s4404_s14 + $0x60] sm:$0xff]  }
  0x86   : > { %882 = vxpose.xlu1.c.b16.cont [4/8] %v3841_v7, 128  ;;  %3218 = vmatpush3.bf16.msra.mxu0 %v4371_v19  ;;  %v3872_v34 = vld [vmem:[%s4429_s2 + $0x4] ss:$8 sps:$4 sm:$0xff]   ;;  %v3870_v41 = vld [vmem:[%s4429_s2] ss:$8 sps:$4 sm:$0xff]   ;;  %v3877_v43 = vld [vmem:[%s4429_s2 + $0x14] ss:$8 sps:$4 sm:$0xff]  }
  0x87   : > { %3219 = vmatprep.subr.bf16.mxu0 %v4377_v20  ;;  %686 = vmatprep.mubr.bf16.mxu0 %v3872_v34  ;;  %v3881_v44 = vld [vmem:[%s4404_s14 + $0x20] sm:$0xff]   ;;  %v3882_v45 = vld [vmem:[%s4404_s14 + $0x68] sm:$0xff]   ;;  %v3879_v47 = vld [vmem:[%s4429_s2 + $0x10] ss:$8 sps:$4 sm:$0xff]  }
  0x88   : > { %3282 = vmatpush3.bf16.msra.mxu1 %v4371_v19  ;;  %v3883_v46 = vld [vmem:[%s4404_s14 + $0x28] sm:$0xff]   ;;  %v3887_v48 = vld [vmem:[%s4404_s14 + $0x70] sm:$0xff]   ;;  %v3889_v51 = vld [vmem:[%s4404_s14 + $0x78] sm:$0xff]  }
  0x89   : > { %899 = vxpose.xlu0.c.b16.cont [5/8] %v3842_v8, 128  ;;  %3283 = vmatprep.subr.bf16.mxu1 %v4377_v20  ;;  %v3884_v49 = vld [vmem:[%s4429_s2 + $0x24] ss:$8 sps:$4 sm:$0xff]   ;;  %v3888_v50 = vld [vmem:[%s4404_s14 + $0x30] sm:$0xff]   ;;  %v3890_v52 = vld [vmem:[%s4404_s14 + $0x38] sm:$0xff]  }
  0x8a   : > { %883 = vxpose.xlu1.c.b16.cont [5/8] %v3843_v9, 128  ;;  %3220 = vmatpush3.bf16.msra.mxu0 %v4387_v23  ;;  %v3886_v53 = vld [vmem:[%s4429_s2 + $0x20] ss:$8 sps:$4 sm:$0xff]   ;;  %v3891_v54 = vld [vmem:[%s4429_s2 + $0x34] ss:$8 sps:$4 sm:$0xff]   ;;  %v3893_v55 = vld [vmem:[%s4429_s2 + $0x30] ss:$8 sps:$4 sm:$0xff]  }
  0x8b   : > { %3221 = vmatprep.subr.bf16.mxu0 %v4395_v24  ;;  %v3894_v56 = vld [vmem:[%s4429_s2 + $0x44] ss:$8 sps:$4 sm:$0xff]   ;;  %v3896_v57 = vld [vmem:[%s4429_s2 + $0x40] ss:$8 sps:$4 sm:$0xff]   ;;  %v3897_v58 = vld [vmem:[%s4429_s2 + $0x54] ss:$8 sps:$4 sm:$0xff]  }
  0x8c   : > { %3284 = vmatpush3.bf16.msra.mxu1 %v4387_v23  ;;  %v3899_v59 = vld [vmem:[%s4429_s2 + $0x50] ss:$8 sps:$4 sm:$0xff]   ;;  %v3900_v60 = vld [vmem:[%s4429_s2 + $0x64] ss:$8 sps:$4 sm:$0xff]   ;;  %v3902_v61 = vld [vmem:[%s4429_s2 + $0x60] ss:$8 sps:$4 sm:$0xff]  }
  0x8d   : > { %900 = vxpose.xlu0.c.b16.cont [6/8] %v3844_v10, 128  ;;  %3285 = vmatprep.subr.bf16.mxu1 %v4395_v24  ;;  %v3903_v62 = vld [vmem:[%s4429_s2 + $0x74] ss:$8 sps:$4 sm:$0xff]   ;;  %v3905_v1 = vld [vmem:[%s4429_s2 + $0x70] ss:$8 sps:$4 sm:$0xff]   ;;  %v3908_v2 = vld [vmem:[%s4315_s26 + $0x4] ss:$8 sps:$4 sm:$0xff]  }
  0x8e   : > { %884 = vxpose.xlu1.c.b16.cont [6/8] %v3845_v12, 128  ;;  %3222 = vmatpush3.bf16.msra.mxu0 %v4400_v25  ;;  %v3906_v6 = vld [vmem:[%s4315_s26] ss:$8 sps:$4 sm:$0xff]   ;;  %v3909_v7 = vld [vmem:[%s4315_s26 + $0x14] ss:$8 sps:$4 sm:$0xff]   ;;  %v3912_v12 = vld [vmem:[%s4315_s26 + $0x24] ss:$8 sps:$4 sm:$0xff]  }
  0x8f   : > { %3223 = vmatprep.subr.bf16.mxu0 %v4415_v28  ;;  %v1502_v10 = vld [vmem:[%s4984_s5 + $0x38] sm:$0xff] }
  0x90   : > { %3286 = vmatpush3.bf16.msra.mxu1 %v4400_v25  ;;  %v3927_v34 = vld [vmem:[%s4315_s26 + $0x74] ss:$8 sps:$4 sm:$0xff]  }
  0x91   : > { %901 = vxpose.xlu0.c.b16.cont [7/8] %v3846_v17, 128  ;;  %3287 = vmatprep.subr.bf16.mxu1 %v4415_v28 }
  0x92   : > { %885 = vxpose.xlu1.c.b16.cont [7/8] %v3847_v18, 128  ;;  %3224 = vmatpush3.bf16.msra.mxu0 %v4420_v29 }
  0x93   : > { %3225 = vmatprep.subr.bf16.mxu0 %v4438_v32 }
  0x94   : > { %3288 = vmatpush3.bf16.msra.mxu1 %v4420_v29 }
  0x95   : > { %902 = vxpose.xlu0.c.b16.end [8/8] %v3848_v21, 128  ;;  %3289 = vmatprep.subr.bf16.mxu1 %v4438_v32  ;;  %v1498_v21 = vld [vmem:[%s4984_s5 + $0x18] sm:$0xff] }
  0x96   : > { %886 = vxpose.xlu1.c.b16.end [8/8] %v3849_v22, 128  ;;  %3226 = vmatpush3.bf16.msra.mxu0 %v4443_v33  ;;  %v3918_v22 = vld [vmem:[%s4315_s26 + $0x44] ss:$8 sps:$4 sm:$0xff]  }
  0x97   : > { %3227 = vmatprep.subr.bf16.mxu0 %v4455_v37 }
  0x98   : > { %3290 = vmatpush3.bf16.msra.mxu1 %v4443_v33 }
  0x99   : > { %1345 = vxpose.xlu0.c.b16.start [1/8] %v3864_v26, 128  ;;  %3291 = vmatprep.subr.bf16.mxu1 %v4455_v37  ;;  %v3921_v26 = vld [vmem:[%s4315_s26 + $0x54] ss:$8 sps:$4 sm:$0xff]  }
  0x9a   : > { %1329 = vxpose.xlu1.c.b16.start [1/8] %v3865_v27, 128  ;;  %3228 = vmatpush3.bf16.msra.mxu0 %v4461_v38 }
  0x9b   : > { %3341 = vmatprep.subr.bf16.mxu0 %v4335_v11 }
  0x9c   : > { %3292 = vmatpush3.bf16.msra.mxu1 %v4461_v38 }
  0x9d   : > { %1346 = vxpose.xlu0.c.b16.cont [2/8] %v3868_v30, 128  ;;  %687 = vmatmul.mubr.bf16.vlgmr.msra.gmra.mxu0 %v3870_v41  ;;  %v3924_v30 = vld [vmem:[%s4315_s26 + $0x64] ss:$8 sps:$4 sm:$0xff]  }
  0x9e   : > { %1330 = vxpose.xlu1.c.b16.cont [2/8] %v3869_v31, 128  ;;  %694 = vmatprep.mubr.bf16.mxu0 %v3877_v43  ;;  %v1500_v41 = vld [vmem:[%s4984_s5 + $0x28] sm:$0xff] }
  0x9f   : > { %3342 = vmatpush3.bf16.msra.mxu0 %v4341_v13  ;;  %3405 = vmatprep.subr.bf16.mxu1 %v4335_v11  ;;  %v3911_v11 = vld [vmem:[%s4315_s26 + $0x10] ss:$8 sps:$4 sm:$0xff]  }
  0xa0   : > { %3343 = vmatprep.subr.bf16.mxu0 %v4347_v14 }
  0xa1   : > { %1347 = vxpose.xlu0.c.b16.cont [3/8] %v3873_v35, 128 }
  0xa2   : > { %1331 = vxpose.xlu1.c.b16.cont [3/8] %v3874_v36, 128 }
  0xa3   : > { %3344 = vmatpush3.bf16.msra.mxu0 %v4353_v15 }
  0xa4   : > { %3345 = vmatprep.subr.bf16.mxu0 %v4359_v16 }
  0xa5   : > { %1348 = vxpose.xlu0.c.b16.cont [4/8] %v3875_v39, 128  ;;  %695 = vmatmul.mubr.bf16.gmra.mxu0 %v3879_v47  ;;  %v1496_v39 = vld [vmem:[%s4984_s5 + $0x8] sm:$0xff] }
  0xa6   : > { %1332 = vxpose.xlu1.c.b16.cont [4/8] %v3876_v40, 128  ;;  %702 = vmatprep.mubr.bf16.mxu0 %v3884_v49  ;;  %v1495_v40 = vld [vmem:[%s4984_s5] sm:$0xff] }
  0xa7   : > { %3346 = vmatpush3.bf16.msra.mxu0 %v4371_v19 }
  0xa8   : > { %3347 = vmatprep.subr.bf16.mxu0 %v4377_v20 }
  0xa9   : > { %1349 = vxpose.xlu0.c.b16.cont [5/8] %v3880_v42, 128 }
  0xaa   : > { %1333 = vxpose.xlu1.c.b16.cont [5/8] %v3881_v44, 128  ;;  %v1499_v44 = vld [vmem:[%s4984_s5 + $0x20] sm:$0xff] }
  0xab   : > { %3348 = vmatpush3.bf16.msra.mxu0 %v4387_v23 }
  0xac   : > { %3349 = vmatprep.subr.bf16.mxu0 %v4395_v24 }
  0xad   : > { %1350 = vxpose.xlu0.c.b16.cont [6/8] %v3882_v45, 128  ;;  %703 = vmatmul.mubr.bf16.gmra.mxu0 %v3886_v53 }
  0xae   : > { %1334 = vxpose.xlu1.c.b16.cont [6/8] %v3883_v46, 128  ;;  %710 = vmatprep.mubr.bf16.mxu0 %v3891_v54 }
  0xaf   : > { %3350 = vmatpush3.bf16.msra.mxu0 %v4400_v25 }
  0xb0   : > { %3351 = vmatprep.subr.bf16.mxu0 %v4415_v28 }
  0xb1   : > { %1351 = vxpose.xlu0.c.b16.cont [7/8] %v3887_v48, 128 }
  0xb2   : > { %1335 = vxpose.xlu1.c.b16.cont [7/8] %v3888_v50, 128 }
  0xb3   : > { %3352 = vmatpush3.bf16.msra.mxu0 %v4420_v29 }
  0xb4   : > { %3353 = vmatprep.subr.bf16.mxu0 %v4438_v32 }
  0xb5   : > { %1352 = vxpose.xlu0.c.b16.end [8/8] %v3889_v51, 128  ;;  %711 = vmatmul.mubr.bf16.gmra.mxu0 %v3893_v55  ;;  %v4570_v51 = vld [vmem:[%s4984_s5 + $0x58] sm:$0xff] }
  0xb6   : > { %1336 = vxpose.xlu1.c.b16.end [8/8] %v3890_v52, 128  ;;  %718 = vmatprep.mubr.bf16.mxu0 %v3894_v56 }
  0xb7   : > { %3354 = vmatpush3.bf16.msra.mxu0 %v4443_v33 }
  0xb8   : > { %3355 = vmatprep.subr.bf16.mxu0 %v4455_v37 }
  0xbb   : > { %3356 = vmatpush3.bf16.msra.mxu0 %v4461_v38 }
  0xbc   : > { %3589 = vmatprep.subr.mxu0 %v1502_v10 }
  0xbd   : > { %719 = vmatmul.mubr.bf16.gmra.mxu0 %v3896_v57  ;;  %v2106_v57 = vld [vmem:[%s4984_s5 + $0x78] sm:$0xff] }
  0xbe   : > { %726 = vmatprep.mubr.bf16.mxu0 %v3897_v58 }
  0xc5   : > { %727 = vmatmul.mubr.bf16.gmra.mxu0 %v3899_v59 }
  0xc6   : > { %734 = vmatprep.mubr.bf16.mxu0 %v3900_v60 }
  0xcd   : > { %735 = vmatmul.mubr.bf16.gmra.mxu0 %v3902_v61 }
  0xce   : > { %742 = vmatprep.mubr.bf16.mxu0 %v3903_v62 }
  0xd5   : > { %743 = vmatmul.mubr.bf16.gmra.mxu0 %v3905_v1  ;;  %v2105_v1 = vld [vmem:[%s4984_s5 + $0x70] sm:$0xff] }
  0xd6   : > { %1136 = vmatprep.mubr.bf16.mxu0 %v3908_v2 }
  0xdb   : > { %v903_v63 = vpop.trf.xlu0 }
  0xdc   : > { %943 = vmatprep.mubr.bf16.mxu1 %v903_v63  ;;  %v887_v0 = vpop.trf.xlu1 }
  0xdd   : > { %944 = vmatmul.mubr.bf16.vlgmr.msra.gmra.mxu1 %v887_v0  ;;  %1137 = vmatmul.mubr.bf16.vlgmr.msra.gmra.mxu0 %v3906_v6  ;;  %v2103_v6 = vld [vmem:[%s4984_s5 + $0x60] sm:$0xff] }
  0xde   : > { %3406 = vmatpush3.bf16.msra.mxu1 %v4341_v13  ;;  %1144 = vmatprep.mubr.bf16.mxu0 %v3909_v7 }
  0xdf   : > { %v904_v3 = vpop.trf.xlu0  ;;  %3407 = vmatprep.subr.bf16.mxu1 %v4347_v14  ;;  %3590 = vmatpush3.msra.mxu0 %v1502_v10 }
  0xe0   : > { %951 = vmatprep.mubr.bf16.mxu1 %v904_v3  ;;  %v888_v4 = vpop.trf.xlu1  ;;  %v2104_v3 = vld [vmem:[%s4984_s5 + $0x68] sm:$0xff] }
  0xe2   : > { %3408 = vmatpush3.bf16.msra.mxu1 %v4353_v15  ;;  %v3914_v15 = vld [vmem:[%s4315_s26 + $0x20] ss:$8 sps:$4 sm:$0xff]  }
  0xe3   : > { %v905_v5 = vpop.trf.xlu0  ;;  %3409 = vmatprep.subr.bf16.mxu1 %v4359_v16  ;;  %v3915_v16 = vld [vmem:[%s4315_s26 + $0x34] ss:$8 sps:$4 sm:$0xff]  }
  0xe4   : > { %v889_v8 = vpop.trf.xlu1 }
  0xe5   : > { %952 = vmatmul.mubr.bf16.gmra.mxu1 %v888_v4  ;;  %1145 = vmatmul.mubr.bf16.gmra.mxu0 %v3911_v11 }
  0xe6   : > { %959 = vmatprep.mubr.bf16.mxu1 %v905_v5  ;;  %3410 = vmatpush3.bf16.msra.mxu1 %v4371_v19  ;;  %v1501_v19 = vld [vmem:[%s4984_s5 + $0x30] sm:$0xff] }
  0xe7   : > { %3411 = vmatprep.subr.bf16.mxu1 %v4377_v20  ;;  %v906_v9 = vpop.trf.xlu0  ;;  %1152 = vmatprep.mubr.bf16.mxu0 %v3912_v12  ;;  %v3917_v20 = vld [vmem:[%s4315_s26 + $0x30] ss:$8 sps:$4 sm:$0xff]  }
  0xe8   : > { %v890_v13 = vpop.trf.xlu1  ;;  %3591 = vmatprep.subr.mxu0 %v1501_v19 }
  0xe9   : > { %3592 = vmatpush3.msra.mxu0 %v1501_v19 }
  0xea   : > { %3412 = vmatpush3.bf16.msra.mxu1 %v4387_v23  ;;  %3593 = vmatprep.subr.mxu0 %v1500_v41 }
  0xeb   : > { %3413 = vmatprep.subr.bf16.mxu1 %v4395_v24  ;;  %v907_v14 = vpop.trf.xlu0  ;;  %3594 = vmatpush3.msra.mxu0 %v1500_v41 }
  0xec   : > { %v891_v17 = vpop.trf.xlu1  ;;  %3595 = vmatprep.subr.mxu0 %v1499_v44 }
  0xed   : > { %960 = vmatmul.mubr.bf16.gmra.mxu1 %v889_v8  ;;  %1153 = vmatmul.mubr.bf16.gmra.mxu0 %v3914_v15 }
  0xee   : > { %967 = vmatprep.mubr.bf16.mxu1 %v906_v9  ;;  %3414 = vmatpush3.bf16.msra.mxu1 %v4400_v25  ;;  %v3920_v25 = vld [vmem:[%s4315_s26 + $0x40] ss:$8 sps:$4 sm:$0xff]  }
  0xef   : > { %3415 = vmatprep.subr.bf16.mxu1 %v4415_v28  ;;  %1160 = vmatprep.mubr.bf16.mxu0 %v3915_v16  ;;  %v908_v18 = vpop.trf.xlu0 }
  0xf0   : > { %v892_v23 = vpop.trf.xlu1  ;;  %3596 = vmatpush3.msra.mxu0 %v1499_v44 }
  0xf1   : > { %3653 = vmatprep.subr.mxu0 %v4570_v51 }
  0xf2   : > { %3416 = vmatpush3.bf16.msra.mxu1 %v4420_v29  ;;  %v3923_v29 = vld [vmem:[%s4315_s26 + $0x50] ss:$8 sps:$4 sm:$0xff]  }
  0xf3   : > { %3417 = vmatprep.subr.bf16.mxu1 %v4438_v32  ;;  %v909_v24 = vpop.trf.xlu0 }
  0xf4   : > { %v893_v27 = vpop.trf.xlu1 }
  0xf5   : > { %968 = vmatmul.mubr.bf16.gmra.mxu1 %v890_v13  ;;  %1161 = vmatmul.mubr.bf16.gmra.mxu0 %v3917_v20 }
  0xf6   : > { %975 = vmatprep.mubr.bf16.mxu1 %v907_v14  ;;  %3418 = vmatpush3.bf16.msra.mxu1 %v4443_v33  ;;  %v3926_v33 = vld [vmem:[%s4315_s26 + $0x60] ss:$8 sps:$4 sm:$0xff]  }
  0xf7   : > { %3419 = vmatprep.subr.bf16.mxu1 %v4455_v37  ;;  %1168 = vmatprep.mubr.bf16.mxu0 %v3918_v22  ;;  %v910_v28 = vpop.trf.xlu0  ;;  %v1497_v37 = vld [vmem:[%s4984_s5 + $0x10] sm:$0xff] }
  0xf8   : > { %v894_v31 = vpop.trf.xlu1 }
  0xfa   : > { %3420 = vmatpush3.bf16.msra.mxu1 %v4461_v38  ;;  %v3929_v38 = vld [vmem:[%s4315_s26 + $0x70] ss:$8 sps:$4 sm:$0xff]   ;;  %s1459_s26 = sshra.s32 %s3070_s22, 3 }
  0xfb   : > { %3621 = vmatprep.subr.mxu1 %v1498_v21  ;;  %v1353_v32 = vpop.trf.xlu0  ;;  %s3071_s20 = sshll.u32 %s1459_s26, 2 }
  0xfc   : > { %v1337_v35 = vpop.trf.xlu1  ;;  %s4644_s13 = scalar_lea.vmem %s4983_s4, %s3071_s20  ;;  %s5016_s20 = sld [smem:[#allocation17_spill]] }
  0xfd   : > { %976 = vmatmul.mubr.bf16.gmra.mxu1 %v891_v17  ;;  %1169 = vmatmul.mubr.bf16.gmra.mxu0 %v3920_v25 }
  0xfe   : > { %983 = vmatprep.mubr.bf16.mxu1 %v908_v18  ;;  %1176 = vmatprep.mubr.bf16.mxu0 %v3921_v26 }
  0xff   : > { %v1354_v36 = vpop.trf.xlu0 }
 0x100   : > { %v1338_v42 = vpop.trf.xlu1 }
 0x102   : > { %s4916_s9 = scalar_lea.vmem %s5016_s20, %s3173_s21 }
 0x103   : > { %v1355_v43 = vpop.trf.xlu0 }
 0x104   : > { %v1339_v45 = vpop.trf.xlu1 }
 0x105   : > { %984 = vmatmul.mubr.bf16.gmra.mxu1 %v892_v23  ;;  %1177 = vmatmul.mubr.bf16.gmra.mxu0 %v3923_v29 }
 0x106   : > { %991 = vmatprep.mubr.bf16.mxu1 %v909_v24  ;;  %1184 = vmatprep.mubr.bf16.mxu0 %v3924_v30 }
 0x107   : > { %v1356_v46 = vpop.trf.xlu0 }
 0x108   : > { %v1340_v47 = vpop.trf.xlu1 }
 0x10b   : > { %v1357_v48 = vpop.trf.xlu0 }
 0x10c   : > { %v1341_v49 = vpop.trf.xlu1 }
 0x10d   : > { %992 = vmatmul.mubr.bf16.gmra.mxu1 %v893_v27  ;;  %1185 = vmatmul.mubr.bf16.gmra.mxu0 %v3926_v33 }
 0x10e   : > { %999 = vmatprep.mubr.bf16.mxu1 %v910_v28  ;;  %1192 = vmatprep.mubr.bf16.mxu0 %v3927_v34 }
 0x10f   : > { %v1358_v50 = vpop.trf.xlu0 }
 0x110   : > { %v1342_v52 = vpop.trf.xlu1 }
 0x113   : > { %v1359_v53 = vpop.trf.xlu0 }
 0x114   : > { %v1343_v54 = vpop.trf.xlu1 }
 0x115   : > { %1000 = vmatmul.mubr.bf16.gmra.mxu1 %v894_v31  ;;  %1193 = vmatmul.mubr.bf16.gmra.mxu0 %v3929_v38 }
 0x116   : > { %1393 = vmatprep.mubr.bf16.mxu1 %v1353_v32 }
 0x117   : > { %v1360_v55 = vpop.trf.xlu0 }
 0x118   : > { %v1344_v56 = vpop.trf.xlu1 }
 0x11d   : > { %1394 = vmatmul.mubr.bf16.vlgmr.msra.gmra.mxu1 %v1337_v35 }
 0x11e   : > { %1401 = vmatprep.mubr.bf16.mxu1 %v1354_v36  ;;  %3622 = vmatpush3.msra.mxu1 %v1498_v21 }
 0x11f   : > { %3623 = vmatprep.subr.mxu1 %v1497_v37 }
 0x120   : > { %3624 = vmatpush3.msra.mxu1 %v1497_v37 }
 0x121   : > { %3625 = vmatprep.subr.mxu1 %v1496_v39 }
 0x122   : > { %3626 = vmatpush3.msra.mxu1 %v1496_v39 }
 0x123   : > { %3627 = vmatprep.subr.mxu1 %v1495_v40 }
 0x124   : > { %3628 = vmatpush3.msra.mxu1 %v1495_v40 }
 0x125   : > { %1402 = vmatmul.mubr.bf16.gmra.mxu1 %v1338_v42  ;;  %3685 = vmatprep.subr.mxu1 %v2106_v57 }
 0x126   : > { %1409 = vmatprep.mubr.bf16.mxu1 %v1355_v43 }
 0x12d   : > { %1410 = vmatmul.mubr.bf16.gmra.mxu1 %v1339_v45 }
 0x12e   : > { %1417 = vmatprep.mubr.bf16.mxu1 %v1356_v46 }
 0x135   : > { %1418 = vmatmul.mubr.bf16.gmra.mxu1 %v1340_v47 }
 0x136   : > { %1425 = vmatprep.mubr.bf16.mxu1 %v1357_v48 }
 0x13d   : > { %1426 = vmatmul.mubr.bf16.gmra.mxu1 %v1341_v49 }
 0x13e   : > { %1433 = vmatprep.mubr.bf16.mxu1 %v1358_v50  ;;  %v1892_v50 = vld [vmem:[%s4984_s5 + $0x50] sm:$0xff] }
 0x145   : > { %1434 = vmatmul.mubr.bf16.gmra.mxu1 %v1342_v52 }
 0x146   : > { %1441 = vmatprep.mubr.bf16.mxu1 %v1359_v53 }
 0x14d   : > { %1442 = vmatmul.mubr.bf16.gmra.mxu1 %v1343_v54  ;;  %v1891_v54 = vld [vmem:[%s4984_s5 + $0x48] sm:$0xff] }
 0x14e   : > { %1449 = vmatprep.mubr.bf16.mxu1 %v1360_v55 }
 0x155   : > { %1450 = vmatmul.mubr.bf16.gmra.mxu1 %v1344_v56 }
 0x15d   : > { %v3229_v58 = vpop.f32.mrf.mxu0 }
 0x15f   : > { %v3230_v59 = vpop.f32.mrf.mxu0 }
 0x160   : > { %v3231_v60 = vadd.f32 %v3230_v59, %v3229_v58  ;;  %v1890_v59 = vld [vmem:[%s4984_s5 + $0x40] sm:$0xff] }
 0x161   : > { %v3232_v61 = vpop.f32.mrf.mxu0 }
 0x162   : > { %3629 = vmatprep.mubr.msk.f32.mxu1 %vm1503_vm0, %v3231_v60 }
 0x163   : > { %v3233_v62 = vpop.f32.mrf.mxu0 }
 0x164   : > { %v3234_v63 = vadd.f32 %v3233_v62, %v3232_v61 }
 0x165   : > { %v3235_v0 = vpop.f32.mrf.mxu0 }
 0x166   : > { %3630 = vmatmul.mubr.msk.f32.vlgmr.msra.gmra.mxu1 %vm1503_vm0, %v3234_v63  ;;  %v4617_v63 = vld [vmem:[%s4984_s5 + $0x98] sm:$0xff] }
 0x167   : > { %v3236_v2 = vpop.f32.mrf.mxu0  ;;  %3686 = vmatpush3.msra.mxu1 %v2106_v57 }
 0x168   : > { %v3237_v4 = vadd.f32 %v3236_v2, %v3235_v0  ;;  %3687 = vmatprep.subr.mxu1 %v2105_v1 }
 0x169   : > { %v3238_v5 = vpop.f32.mrf.mxu0  ;;  %3688 = vmatpush3.msra.mxu1 %v2105_v1 }
 0x16a   : > { %3632 = vmatprep.mubr.msk.f32.mxu1 %vm1503_vm0, %v3237_v4  ;;  %3689 = vmatprep.subr.mxu1 %v2104_v3 }
 0x16b   : > { %v3239_v7 = vpop.f32.mrf.mxu0  ;;  %3690 = vmatpush3.msra.mxu1 %v2104_v3 }
 0x16c   : > { %v3240_v8 = vadd.f32 %v3239_v7, %v3238_v5  ;;  %3691 = vmatprep.subr.mxu1 %v2103_v6 }
 0x16d   : > { %v3241_v9 = vpop.f32.mrf.mxu0  ;;  %3692 = vmatpush3.msra.mxu1 %v2103_v6 }
 0x16e   : > { %3633 = vmatmul.mubr.msk.f32.gmra.mxu1 %vm1503_vm0, %v3240_v8 }
 0x16f   : > { %v3242_v10 = vpop.f32.mrf.mxu0 }
 0x170   : > { %v3243_v11 = vadd.f32 %v3242_v10, %v3241_v9 }
 0x171   : > { %v3244_v12 = vpop.f32.mrf.mxu0 }
 0x172   : > { %3635 = vmatprep.mubr.msk.f32.mxu1 %vm1503_vm0, %v3243_v11 }
 0x173   : > { %v3245_v13 = vpop.f32.mrf.mxu0 }
 0x174   : > { %v3246_v14 = vadd.f32 %v3245_v13, %v3244_v12 }
 0x175   : > { %v3247_v15 = vpop.f32.mrf.mxu0 }
 0x176   : > { %3636 = vmatmul.mubr.msk.f32.gmra.mxu1 %vm1503_vm0, %v3246_v14 }
 0x177   : > { %v3248_v16 = vpop.f32.mrf.mxu0 }
 0x178   : > { %v3249_v17 = vadd.f32 %v3248_v16, %v3247_v15 }
 0x179   : > { %v3250_v18 = vpop.f32.mrf.mxu0 }
 0x17a   : > { %3638 = vmatprep.mubr.msk.f32.mxu1 %vm1503_vm0, %v3249_v17 }
 0x17b   : > { %v3251_v19 = vpop.f32.mrf.mxu0 }
 0x17c   : > { %v3252_v20 = vadd.f32 %v3251_v19, %v3250_v18 }
 0x17d   : > { %v3253_v21 = vpop.f32.mrf.mxu0 }
 0x17e   : > { %3639 = vmatmul.mubr.msk.f32.gmra.mxu1 %vm1503_vm0, %v3252_v20 }
 0x17f   : > { %v3254_v22 = vpop.f32.mrf.mxu0 }
 0x180   : > { %v3255_v23 = vadd.f32 %v3254_v22, %v3253_v21 }
 0x181   : > { %v3256_v24 = vpop.f32.mrf.mxu0 }
 0x182   : > { %3641 = vmatprep.mubr.msk.f32.mxu1 %vm1503_vm0, %v3255_v23 }
 0x183   : > { %v3257_v25 = vpop.f32.mrf.mxu0 }
 0x184   : > { %v3258_v26 = vadd.f32 %v3257_v25, %v3256_v24 }
 0x185   : > { %v3259_v27 = vpop.f32.mrf.mxu0 }
 0x186   : > { %3642 = vmatmul.mubr.msk.f32.gmra.mxu1 %vm1503_vm0, %v3258_v26 }
 0x187   : > { %v3260_v28 = vpop.f32.mrf.mxu0 }
 0x188   : > { %v3261_v29 = vadd.f32 %v3260_v28, %v3259_v27 }
 0x189   : > { %v3262_v30 = vpop.f32.mrf.mxu0 }
 0x18a   : > { %3644 = vmatprep.mubr.msk.f32.mxu1 %vm1503_vm0, %v3261_v29 }
 0x18b   : > { %v3263_v31 = vpop.f32.mrf.mxu0 }
 0x18c   : > { %v3264_v32 = vadd.f32 %v3263_v31, %v3262_v30 }
 0x18d   : > { %v3265_v33 = vpop.f32.mrf.mxu0 }
 0x18e   : > { %3645 = vmatmul.mubr.msk.f32.gmra.mxu1 %vm1503_vm0, %v3264_v32 }
 0x18f   : > { %v3266_v34 = vpop.f32.mrf.mxu0 }
 0x190   : > { %v3267_v35 = vadd.f32 %v3266_v34, %v3265_v33 }
 0x191   : > { %v3268_v37 = vpop.f32.mrf.mxu0 }
 0x192   : > { %3647 = vmatprep.mubr.msk.f32.mxu1 %vm1503_vm0, %v3267_v35 }
 0x193   : > { %v3269_v39 = vpop.f32.mrf.mxu0 }
 0x194   : > { %v3270_v41 = vadd.f32 %v3269_v39, %v3268_v37 }
 0x195   : > { %v3271_v43 = vpop.f32.mrf.mxu0 }
 0x196   : > { %3648 = vmatmul.mubr.msk.f32.gmra.mxu1 %vm1503_vm0, %v3270_v41 }
 0x197   : > { %v3272_v45 = vpop.f32.mrf.mxu0 }
 0x198   : > { %v3273_v47 = vadd.f32 %v3272_v45, %v3271_v43 }
 0x199   : > { %v3274_v49 = vpop.f32.mrf.mxu0 }
 0x19a   : > { %3650 = vmatprep.mubr.msk.f32.mxu1 %vm1503_vm0, %v3273_v47 }
 0x19b   : > { %v3275_v53 = vpop.f32.mrf.mxu0 }
 0x19c   : > { %v3276_v56 = vadd.f32 %v3275_v53, %v3274_v49 }
 0x19d   : > { %v3293_v36 = vpop.f32.mrf.mxu1  ;;  %v3357_v58 = vpop.f32.mrf.mxu0 }
 0x19e   : > { %3651 = vmatmul.mubr.msk.f32.gmra.mxu1 %vm1503_vm0, %v3276_v56 }
 0x19f   : > { %v3294_v38 = vpop.f32.mrf.mxu1  ;;  %v3358_v61 = vpop.f32.mrf.mxu0 }
 0x1a0   : > { %v3295_v40 = vadd.f32 %v3294_v38, %v3293_v36  ;;  %v3359_v62 = vadd.f32 %v3358_v61, %v3357_v58 }
 0x1a1   : > { %v3296_v42 = vpop.f32.mrf.mxu1  ;;  %v3360_v1 = vpop.f32.mrf.mxu0 }
 0x1a2   : > { %3597 = vmatprep.mubr.msk.f32.mxu0 %vm1503_vm0, %v3295_v40  ;;  %3693 = vmatprep.mubr.msk.f32.mxu1 %vm1503_vm0, %v3359_v62 }
 0x1a3   : > { %v3297_v44 = vpop.f32.mrf.mxu1  ;;  %v3361_v3 = vpop.f32.mrf.mxu0 }
 0x1a4   : > { %v3298_v46 = vadd.f32 %v3297_v44, %v3296_v42  ;;  %v3362_v5 = vadd.f32 %v3361_v3, %v3360_v1 }
 0x1a5   : > { %v3299_v48 = vpop.f32.mrf.mxu1  ;;  %v3363_v7 = vpop.f32.mrf.mxu0 }
 0x1a6   : > { %3598 = vmatmul.mubr.msk.f32.vlgmr.msra.gmra.mxu0 %vm1503_vm0, %v3298_v46  ;;  %3694 = vmatmul.mubr.msk.f32.vlgmr.msra.gmra.mxu1 %vm1503_vm0, %v3362_v5 }
 0x1a7   : > { %v3300_v52 = vpop.f32.mrf.mxu1  ;;  %3654 = vmatpush3.msra.mxu0 %v4570_v51  ;;  %v3364_v9 = vpop.f32.mrf.mxu0 }
 0x1a8   : > { %v3301_v55 = vadd.f32 %v3300_v52, %v3299_v48  ;;  %3655 = vmatprep.subr.mxu0 %v1892_v50  ;;  %v3365_v11 = vadd.f32 %v3364_v9, %v3363_v7 }
 0x1a9   : > { %v3302_v57 = vpop.f32.mrf.mxu1  ;;  %3656 = vmatpush3.msra.mxu0 %v1892_v50  ;;  %v3366_v13 = vpop.f32.mrf.mxu0 }
 0x1aa   : > { %3600 = vmatprep.mubr.msk.f32.mxu0 %vm1503_vm0, %v3301_v55  ;;  %3657 = vmatprep.subr.mxu0 %v1891_v54 }
 0x1ab   : > { %v3303_v60 = vpop.f32.mrf.mxu1  ;;  %3658 = vmatpush3.msra.mxu0 %v1891_v54  ;;  %3696 = vmatprep.mubr.msk.f32.mxu1 %vm1503_vm0, %v3365_v11  ;;  %v3367_v15 = vpop.f32.mrf.mxu0 }
 0x1ac   : > { %v3304_v51 = vadd.f32 %v3303_v60, %v3302_v57  ;;  %3659 = vmatprep.subr.mxu0 %v1890_v59  ;;  %v3368_v17 = vadd.f32 %v3367_v15, %v3366_v13 }
 0x1ad   : > { %v3305_v0 = vpop.f32.mrf.mxu1  ;;  %3660 = vmatpush3.msra.mxu0 %v1890_v59  ;;  %v3369_v19 = vpop.f32.mrf.mxu0 }
 0x1ae   : > { %3601 = vmatmul.mubr.msk.f32.gmra.mxu0 %vm1503_vm0, %v3304_v51  ;;  %3717 = vmatprep.subr.mxu0 %v4617_v63 }
 0x1af   : > { %v3306_v2 = vpop.f32.mrf.mxu1  ;;  %3697 = vmatmul.mubr.msk.f32.gmra.mxu1 %vm1503_vm0, %v3368_v17  ;;  %v3370_v21 = vpop.f32.mrf.mxu0 }
 0x1b0   : > { %v3307_v4 = vadd.f32 %v3306_v2, %v3305_v0  ;;  %v3371_v23 = vadd.f32 %v3370_v21, %v3369_v19  ;;  %v3175_v2 = vld [vmem:[%s4644_s13] sm:$0xff]   ;;  %v2318_v21 = vld [vmem:[%s4984_s5 + $0x90] sm:$0xff] }
 0x1b1   : > { %v3308_v6 = vpop.f32.mrf.mxu1  ;;  %v3372_v25 = vpop.f32.mrf.mxu0  ;;  %v3176_v7 = vunpack.c.l.bf16 %v3175_v2 }
 0x1b2   : > { %3603 = vmatprep.mubr.msk.f32.mxu0 %vm1503_vm0, %v3307_v4  ;;  %3699 = vmatprep.mubr.msk.f32.mxu1 %vm1503_vm0, %v3371_v23 }
 0x1b3   : > { %v3309_v8 = vpop.f32.mrf.mxu1  ;;  %v3373_v27 = vpop.f32.mrf.mxu0 }
 0x1b4   : > { %v3310_v10 = vadd.f32 %v3309_v8, %v3308_v6  ;;  %v3374_v29 = vadd.f32 %v3373_v27, %v3372_v25 }
 0x1b5   : > { %v3311_v12 = vpop.f32.mrf.mxu1  ;;  %v3375_v31 = vpop.f32.mrf.mxu0 }
 0x1b6   : > { %3604 = vmatmul.mubr.msk.f32.gmra.mxu0 %vm1503_vm0, %v3310_v10  ;;  %3700 = vmatmul.mubr.msk.f32.gmra.mxu1 %vm1503_vm0, %v3374_v29  ;;  %v3206_v10 = vld [vmem:[%s4644_s13 + $0x8] sm:$0xff]  }
 0x1b7   : > { %v3312_v14 = vpop.f32.mrf.mxu1  ;;  %v3376_v33 = vpop.f32.mrf.mxu0  ;;  %v3181_v23 = vunpack.c.h.bf16 %v3206_v10 }
 0x1b8   : > { %v3313_v16 = vadd.f32 %v3312_v14, %v3311_v12  ;;  %v3377_v35 = vadd.f32 %v3376_v33, %v3375_v31  ;;  %v3177_v14 = vunpack.c.h.bf16 %v3175_v2 }
 0x1b9   : > { %v3314_v18 = vpop.f32.mrf.mxu1  ;;  %v3378_v37 = vpop.f32.mrf.mxu0 }
 0x1ba   : > { %3606 = vmatprep.mubr.msk.f32.mxu0 %vm1503_vm0, %v3313_v16  ;;  %3702 = vmatprep.mubr.msk.f32.mxu1 %vm1503_vm0, %v3377_v35  ;;  %v3180_v16 = vunpack.c.l.bf16 %v3206_v10 }
 0x1bb   : > { %v3315_v20 = vpop.f32.mrf.mxu1  ;;  %v3379_v39 = vpop.f32.mrf.mxu0 }
 0x1bc   : > { %v3316_v22 = vadd.f32 %v3315_v20, %v3314_v18  ;;  %v3380_v41 = vadd.f32 %v3379_v39, %v3378_v37  ;;  %v3207_v18 = vld [vmem:[%s4644_s13 + $0x10] sm:$0xff]  }
 0x1bd   : > { %v3317_v24 = vpop.f32.mrf.mxu1  ;;  %v3381_v43 = vpop.f32.mrf.mxu0  ;;  %v3184_v25 = vunpack.c.l.bf16 %v3207_v18 }
 0x1be   : > { %3607 = vmatmul.mubr.msk.f32.gmra.mxu0 %vm1503_vm0, %v3316_v22  ;;  %3703 = vmatmul.mubr.msk.f32.gmra.mxu1 %vm1503_vm0, %v3380_v41 }
 0x1bf   : > { %v3318_v26 = vpop.f32.mrf.mxu1  ;;  %v3382_v45 = vpop.f32.mrf.mxu0 }
 0x1c0   : > { %v3319_v28 = vadd.f32 %v3318_v26, %v3317_v24  ;;  %v3383_v47 = vadd.f32 %v3382_v45, %v3381_v43  ;;  %v2317_v26 = vld [vmem:[%s4984_s5 + $0x88] sm:$0xff] }
 0x1c1   : > { %v3320_v30 = vpop.f32.mrf.mxu1  ;;  %v3384_v49 = vpop.f32.mrf.mxu0 }
 0x1c2   : > { %3609 = vmatprep.mubr.msk.f32.mxu0 %vm1503_vm0, %v3319_v28  ;;  %3705 = vmatprep.mubr.msk.f32.mxu1 %vm1503_vm0, %v3383_v47  ;;  %v3208_v28 = vld [vmem:[%s4644_s13 + $0x18] sm:$0xff]   ;;  %v3211_v47 = vld [vmem:[%s4644_s13 + $0x30] sm:$0xff]  }
 0x1c3   : > { %v3321_v32 = vpop.f32.mrf.mxu1  ;;  %v3385_v52 = vpop.f32.mrf.mxu0  ;;  %v3189_v39 = vunpack.c.h.bf16 %v3208_v28 }
 0x1c4   : > { %v3322_v34 = vadd.f32 %v3321_v32, %v3320_v30  ;;  %v3386_v54 = vadd.f32 %v3385_v52, %v3384_v49  ;;  %v3185_v32 = vunpack.c.h.bf16 %v3207_v18  ;;  %v3200_v52 = vunpack.c.l.bf16 %v3211_v47 }
 0x1c5   : > { %v3323_v36 = vpop.f32.mrf.mxu1  ;;  %v3387_v56 = vpop.f32.mrf.mxu0 }
 0x1c6   : > { %3610 = vmatmul.mubr.msk.f32.gmra.mxu0 %vm1503_vm0, %v3322_v34  ;;  %3706 = vmatmul.mubr.msk.f32.gmra.mxu1 %vm1503_vm0, %v3386_v54  ;;  %v3188_v34 = vunpack.c.l.bf16 %v3208_v28 }
 0x1c7   : > { %v3324_v38 = vpop.f32.mrf.mxu1  ;;  %v3388_v58 = vpop.f32.mrf.mxu0 }
 0x1c8   : > { %v3325_v40 = vadd.f32 %v3324_v38, %v3323_v36  ;;  %v3389_v60 = vadd.f32 %v3388_v58, %v3387_v56  ;;  %v3209_v36 = vld [vmem:[%s4644_s13 + $0x20] sm:$0xff]  }
 0x1c9   : > { %v3326_v42 = vpop.f32.mrf.mxu1  ;;  %v3390_v51 = vpop.f32.mrf.mxu0  ;;  %v3192_v41 = vunpack.c.l.bf16 %v3209_v36 }
 0x1ca   : > { %3612 = vmatprep.mubr.msk.f32.mxu0 %vm1503_vm0, %v3325_v40  ;;  %3708 = vmatprep.mubr.msk.f32.mxu1 %vm1503_vm0, %v3389_v60 }
 0x1cb   : > { %v3327_v44 = vpop.f32.mrf.mxu1  ;;  %v3391_v0 = vpop.f32.mrf.mxu0 }
 0x1cc   : > { %v3328_v46 = vadd.f32 %v3327_v44, %v3326_v42  ;;  %v3392_v3 = vadd.f32 %v3391_v0, %v3390_v51  ;;  %v3210_v42 = vld [vmem:[%s4644_s13 + $0x28] sm:$0xff]   ;;  %v3193_v44 = vunpack.c.h.bf16 %v3209_v36 }
 0x1cd   : > { %v3329_v48 = vpop.f32.mrf.mxu1  ;;  %v3393_v5 = vpop.f32.mrf.mxu0  ;;  %v3197_v49 = vunpack.c.h.bf16 %v3210_v42 }
 0x1ce   : > { %3613 = vmatmul.mubr.msk.f32.gmra.mxu0 %vm1503_vm0, %v3328_v46  ;;  %3709 = vmatmul.mubr.msk.f32.gmra.mxu1 %vm1503_vm0, %v3392_v3  ;;  %v3196_v46 = vunpack.c.l.bf16 %v3210_v42 }
 0x1cf   : > { %v3330_v50 = vpop.f32.mrf.mxu1  ;;  %v3394_v8 = vpop.f32.mrf.mxu0 }
 0x1d0   : > { %v3331_v53 = vadd.f32 %v3330_v50, %v3329_v48  ;;  %v3395_v11 = vadd.f32 %v3394_v8, %v3393_v5 }
 0x1d1   : > { %v3332_v55 = vpop.f32.mrf.mxu1  ;;  %v3396_v13 = vpop.f32.mrf.mxu0 }
 0x1d2   : > { %3615 = vmatprep.mubr.msk.f32.mxu0 %vm1503_vm0, %v3331_v53  ;;  %3711 = vmatprep.mubr.msk.f32.mxu1 %vm1503_vm0, %v3395_v11  ;;  %v3212_v53 = vld [vmem:[%s4644_s13 + $0x38] sm:$0xff]  }
 0x1d3   : > { %v3333_v57 = vpop.f32.mrf.mxu1  ;;  %v3397_v17 = vpop.f32.mrf.mxu0 }
 0x1d4   : > { %v3334_v59 = vadd.f32 %v3333_v57, %v3332_v55  ;;  %v3398_v19 = vadd.f32 %v3397_v17, %v3396_v13  ;;  %v3201_v55 = vunpack.c.h.bf16 %v3211_v47  ;;  %v3204_v57 = vunpack.c.l.bf16 %v3212_v53 }
 0x1d5   : > { %v3335_v61 = vpop.f32.mrf.mxu1  ;;  %v3399_v22 = vpop.f32.mrf.mxu0 }
 0x1d6   : > { %3616 = vmatmul.mubr.msk.f32.gmra.mxu0 %vm1503_vm0, %v3334_v59  ;;  %3712 = vmatmul.mubr.msk.f32.gmra.mxu1 %vm1503_vm0, %v3398_v19  ;;  %v3205_v59 = vunpack.c.h.bf16 %v3212_v53 }
 0x1d7   : > { %v3336_v62 = vpop.f32.mrf.mxu1  ;;  %v3400_v27 = vpop.f32.mrf.mxu0 }
 0x1d8   : > { %v3337_v1 = vadd.f32 %v3336_v62, %v3335_v61  ;;  %v3401_v29 = vadd.f32 %v3400_v27, %v3399_v22 }
 0x1d9   : > { %v3338_v4 = vpop.f32.mrf.mxu1  ;;  %v3402_v31 = vpop.f32.mrf.mxu0 }
 0x1da   : > { %3618 = vmatprep.mubr.msk.f32.mxu0 %vm1503_vm0, %v3337_v1  ;;  %3714 = vmatprep.mubr.msk.f32.mxu1 %vm1503_vm0, %v3401_v29  ;;  %v2587_v29 = vld [vmem:[%s4986_s7 + $0x18] sm:$0xff] }
 0x1db   : > { %v3339_v6 = vpop.f32.mrf.mxu1  ;;  %v3403_v35 = vpop.f32.mrf.mxu0  ;;  %3749 = vmatprep.subr.mxu1 %v2587_v29 }
 0x1dc   : > { %v3340_v9 = vadd.f32 %v3339_v6, %v3338_v4  ;;  %v3404_v37 = vadd.f32 %v3403_v35, %v3402_v31  ;;  %3750 = vmatpush3.msra.mxu1 %v2587_v29  ;;  %v2584_v31 = vld [vmem:[%s4986_s7] sm:$0xff] }
 0x1dd   : > { %v4652_v12 = vpop.f32.mrf.mxu1 }
 0x1de   : > { %3619 = vmatmul.mubr.msk.f32.gmra.mxu0 %vm1503_vm0, %v3340_v9  ;;  %3715 = vmatmul.mubr.msk.f32.gmra.mxu1 %vm1503_vm0, %v3404_v37 }
 0x1df   : > { %v4656_v15 = vpop.f32.mrf.mxu1  ;;  %3661 = vmatprep.mubr.msk.f32.mxu0 %vm1503_vm0, %v3176_v7 }
 0x1e0   : > { %v3423_v61 = vadd.f32 %v4656_v15, %v4652_v12 }
 0x1e1   : > { %v4660_v20 = vpop.f32.mrf.mxu1 }
 0x1e2   : > { %3662 = vmatmul.mubr.msk.f32.vlgmr.msra.gmra.mxu0 %vm1503_vm0, %v3177_v14 }
 0x1e3   : > { %3718 = vmatpush3.msra.mxu0 %v4617_v63  ;;  %v4668_v24 = vpop.f32.mrf.mxu1  ;;  %3664 = vmatprep.mubr.msk.f32.mxu0 %vm1503_vm0, %v3180_v16  ;;  %v2316_v63 = vld [vmem:[%s4984_s5 + $0x80] sm:$0xff] }
 0x1e4   : > { %3719 = vmatprep.subr.mxu0 %v2318_v21  ;;  %v3426_v0 = vadd.f32 %v4668_v24, %v4660_v20 }
 0x1e5   : > { %v3427_v30 = vpop.f32.mrf.mxu1  ;;  %3720 = vmatpush3.msra.mxu0 %v2318_v21 }
 0x1e6   : > { %3665 = vmatmul.mubr.msk.f32.gmra.mxu0 %vm1503_vm0, %v3181_v23  ;;  %3721 = vmatprep.subr.mxu0 %v2317_v26 }
 0x1e7   : > { %v3428_v33 = vpop.f32.mrf.mxu1  ;;  %3667 = vmatprep.mubr.msk.f32.mxu0 %vm1503_vm0, %v3184_v25  ;;  %3722 = vmatpush3.msra.mxu0 %v2317_v26 }
 0x1e8   : > { %3723 = vmatprep.subr.mxu0 %v2316_v63  ;;  %v3429_v1 = vadd.f32 %v3428_v33, %v3427_v30  ;;  %v2586_v30 = vld [vmem:[%s4986_s7 + $0x10] sm:$0xff] }
 0x1e9   : > { %v3430_v38 = vpop.f32.mrf.mxu1  ;;  %3724 = vmatpush3.msra.mxu0 %v2316_v63  ;;  %3751 = vmatprep.subr.mxu1 %v2586_v30  ;;  %v2585_v63 = vld [vmem:[%s4986_s7 + $0x8] sm:$0xff] }
 0x1ea   : > { %3668 = vmatmul.mubr.msk.f32.gmra.mxu0 %vm1503_vm0, %v3185_v32  ;;  %3752 = vmatpush3.msra.mxu1 %v2586_v30 }
 0x1eb   : > { %v3431_v40 = vpop.f32.mrf.mxu1  ;;  %3670 = vmatprep.mubr.msk.f32.mxu0 %vm1503_vm0, %v3188_v34  ;;  %3753 = vmatprep.subr.mxu1 %v2585_v63 }
 0x1ec   : > { %v3432_v4 = vadd.f32 %v3431_v40, %v3430_v38  ;;  %3754 = vmatpush3.msra.mxu1 %v2585_v63 }
 0x1ed   : > { %v3433_v43 = vpop.f32.mrf.mxu1  ;;  %3755 = vmatprep.subr.mxu1 %v2584_v31 }
 0x1ee   : > { %3671 = vmatmul.mubr.msk.f32.gmra.mxu0 %vm1503_vm0, %v3189_v39  ;;  %3756 = vmatpush3.msra.mxu1 %v2584_v31 }
 0x1ef   : > { %v3434_v45 = vpop.f32.mrf.mxu1  ;;  %3673 = vmatprep.mubr.msk.f32.mxu0 %vm1503_vm0, %v3192_v41 }
 0x1f0   : > { %v3435_v5 = vadd.f32 %v3434_v45, %v3433_v43 }
 0x1f1   : > { %v3436_v48 = vpop.f32.mrf.mxu1 }
 0x1f2   : > { %3674 = vmatmul.mubr.msk.f32.gmra.mxu0 %vm1503_vm0, %v3193_v44 }
 0x1f3   : > { %v3437_v50 = vpop.f32.mrf.mxu1  ;;  %3676 = vmatprep.mubr.msk.f32.mxu0 %vm1503_vm0, %v3196_v46 }
 0x1f4   : > { %v3438_v8 = vadd.f32 %v3437_v50, %v3436_v48 }
 0x1f5   : > { %v3439_v54 = vpop.f32.mrf.mxu1 }
 0x1f6   : > { %3677 = vmatmul.mubr.msk.f32.gmra.mxu0 %vm1503_vm0, %v3197_v49 }
 0x1f7   : > { %v3440_v56 = vpop.f32.mrf.mxu1  ;;  %3679 = vmatprep.mubr.msk.f32.mxu0 %vm1503_vm0, %v3200_v52 }
 0x1f8   : > { %v3441_v9 = vadd.f32 %v3440_v56, %v3439_v54 }
 0x1f9   : > { %v3442_v58 = vpop.f32.mrf.mxu1 }
 0x1fa   : > { %3680 = vmatmul.mubr.msk.f32.gmra.mxu0 %vm1503_vm0, %v3201_v55 }
 0x1fb   : > { %v3443_v60 = vpop.f32.mrf.mxu1  ;;  %3682 = vmatprep.mubr.msk.f32.mxu0 %vm1503_vm0, %v3204_v57 }
 0x1fc   : > { %v3444_v12 = vadd.f32 %v3443_v60, %v3442_v58 }
 0x1fd   : > { %v3445_v51 = vpop.f32.mrf.mxu1 }
 0x1fe   : > { %3683 = vmatmul.mubr.msk.f32.gmra.mxu0 %vm1503_vm0, %v3205_v59 }
 0x1ff   : > { %v3446_v62 = vpop.f32.mrf.mxu1  ;;  %3725 = vmatprep.mubr.msk.f32.mxu0 %vm1503_vm0, %v3423_v61 }
 0x200   : > { %v3447_v13 = vadd.f32 %v3446_v62, %v3445_v51 }
 0x201   : > { %v3448_v2 = vpop.f32.mrf.mxu1 }
 0x202   : > { %3726 = vmatmul.mubr.msk.f32.vlgmr.msra.gmra.mxu0 %vm1503_vm0, %v3426_v0 }
 0x203   : > { %v3449_v3 = vpop.f32.mrf.mxu1  ;;  %3728 = vmatprep.mubr.msk.f32.mxu0 %vm1503_vm0, %v3429_v1 }
 0x204   : > { %v3450_v16 = vadd.f32 %v3449_v3, %v3448_v2 }
 0x205   : > { %v3451_v6 = vpop.f32.mrf.mxu1 }
 0x206   : > { %3729 = vmatmul.mubr.msk.f32.gmra.mxu0 %vm1503_vm0, %v3432_v4 }
 0x207   : > { %v3452_v7 = vpop.f32.mrf.mxu1  ;;  %3731 = vmatprep.mubr.msk.f32.mxu0 %vm1503_vm0, %v3435_v5 }
 0x208   : > { %v3453_v17 = vadd.f32 %v3452_v7, %v3451_v6 }
 0x209   : > { %v3454_v10 = vpop.f32.mrf.mxu1 }
 0x20a   : > { %3732 = vmatmul.mubr.msk.f32.gmra.mxu0 %vm1503_vm0, %v3438_v8 }
 0x20b   : > { %v3455_v11 = vpop.f32.mrf.mxu1  ;;  %3734 = vmatprep.mubr.msk.f32.mxu0 %vm1503_vm0, %v3441_v9 }
 0x20c   : > { %v3456_v20 = vadd.f32 %v3455_v11, %v3454_v10 }
 0x20d   : > { %v3457_v14 = vpop.f32.mrf.mxu1 }
 0x20e   : > { %3735 = vmatmul.mubr.msk.f32.gmra.mxu0 %vm1503_vm0, %v3444_v12 }
 0x20f   : > { %v3458_v15 = vpop.f32.mrf.mxu1  ;;  %3737 = vmatprep.mubr.msk.f32.mxu0 %vm1503_vm0, %v3447_v13 }
 0x210   : > { %v3459_v21 = vadd.f32 %v3458_v15, %v3457_v14 }
 0x211   : > { %v3460_v18 = vpop.f32.mrf.mxu1 }
 0x212   : > { %3738 = vmatmul.mubr.msk.f32.gmra.mxu0 %vm1503_vm0, %v3450_v16 }
 0x213   : > { %v3461_v19 = vpop.f32.mrf.mxu1  ;;  %3740 = vmatprep.mubr.msk.f32.mxu0 %vm1503_vm0, %v3453_v17 }
 0x214   : > { %v3462_v24 = vadd.f32 %v3461_v19, %v3460_v18 }
 0x215   : > { %v3463_v22 = vpop.f32.mrf.mxu1 }
 0x216   : > { %3741 = vmatmul.mubr.msk.f32.gmra.mxu0 %vm1503_vm0, %v3456_v20 }
 0x217   : > { %v3464_v23 = vpop.f32.mrf.mxu1  ;;  %3743 = vmatprep.mubr.msk.f32.mxu0 %vm1503_vm0, %v3459_v21 }
 0x218   : > { %v3465_v25 = vadd.f32 %v3464_v23, %v3463_v22 }
 0x219   : > { %v3466_v26 = vpop.f32.mrf.mxu1 }
 0x21a   : > { %3744 = vmatmul.mubr.msk.f32.gmra.mxu0 %vm1503_vm0, %v3462_v24 }
 0x21b   : > { %v3467_v27 = vpop.f32.mrf.mxu1  ;;  %3746 = vmatprep.mubr.msk.f32.mxu0 %vm1503_vm0, %v3465_v25 }
 0x21c   : > { %v3468_v28 = vadd.f32 %v3467_v27, %v3466_v26 }
 0x21e   : > { %3747 = vmatmul.mubr.msk.f32.gmra.mxu0 %vm1503_vm0, %v3468_v28 }
 0x226   : > { %v3631_v32 = vpop.f32.mrf.mxu1 }
 0x228   : > { %v1811_v34 = vpop.f32.mrf.mxu1 }
 0x22e   : > { %v3634_v36 = vpop.f32.mrf.mxu1 }
 0x230   : > { %v1821_v38 = vpop.f32.mrf.mxu1 }
 0x236   : > { %v3637_v40 = vpop.f32.mrf.mxu1 }
 0x238   : > { %v1831_v42 = vpop.f32.mrf.mxu1 }
 0x23e   : > { %v4729_v44 = vpop.f32.mrf.mxu1 }
 0x240   : > { %v4733_v46 = vpop.f32.mrf.mxu1 }
 0x246   : > { %v4737_v48 = vpop.f32.mrf.mxu1 }
 0x248   : > { %v4741_v50 = vpop.f32.mrf.mxu1 }
 0x24e   : > { %v4745_v53 = vpop.f32.mrf.mxu1 }
 0x250   : > { %v4749_v55 = vpop.f32.mrf.mxu1 }
 0x256   : > { %v4753_v57 = vpop.f32.mrf.mxu1 }
 0x258   : > { %v4757_v59 = vpop.f32.mrf.mxu1 }
 0x25e   : > { %v4761_v61 = vpop.f32.mrf.mxu1 }
 0x25f   : > { %5010 = vst [vmem:[#allocation12_spill] sm:$0xff] %v4761_v61 }
 0x260   : > { %v4767_v0 = vpop.f32.mrf.mxu1 }
 0x261   : > { %5012 = vst [vmem:[#allocation14_spill] sm:$0xff] %v4767_v0 }
 0x266   : > { %v3599_v33 = vpop.f32.mrf.mxu0  ;;  %v3695_v2 = vpop.f32.mrf.mxu1 }
 0x267   : > { %v1817_v21 = vadd.f32 %v3631_v32, %v3599_v33  ;;  %v4786_v32 = vld [vmem:[%s4985_s6] ss:$0 sm:$0xff] }
 0x268   : > { %v1618_v35 = vpop.f32.mrf.mxu0  ;;  %v2221_v5 = vpop.f32.mrf.mxu1 }
 0x269   : > { %v1812_v24 = vadd.f32 %v1811_v34, %v1618_v35 }
 0x26e   : > { %v3602_v37 = vpop.f32.mrf.mxu0 }
 0x26f   : > { %v3698_v7 = vpop.f32.mrf.mxu1  ;;  %v1827_v27 = vadd.f32 %v3634_v36, %v3602_v37 }
 0x270   : > { %v1628_v39 = vpop.f32.mrf.mxu0 }
 0x271   : > { %v2231_v10 = vpop.f32.mrf.mxu1  ;;  %v1822_v63 = vadd.f32 %v1821_v38, %v1628_v39 }
 0x276   : > { %v3605_v41 = vpop.f32.mrf.mxu0  ;;  %v3701_v12 = vpop.f32.mrf.mxu1 }
 0x278   : > { %v1638_v43 = vpop.f32.mrf.mxu0  ;;  %v2241_v15 = vpop.f32.mrf.mxu1 }
 0x27e   : > { %v4731_v45 = vpop.f32.mrf.mxu0  ;;  %v3704_v18 = vpop.f32.mrf.mxu1 }
 0x280   : > { %v4735_v47 = vpop.f32.mrf.mxu0  ;;  %v2251_v22 = vpop.f32.mrf.mxu1 }
 0x286   : > { %v4739_v49 = vpop.f32.mrf.mxu0  ;;  %v3707_v29 = vpop.f32.mrf.mxu1 }
 0x288   : > { %v4743_v52 = vpop.f32.mrf.mxu0  ;;  %v2261_v36 = vpop.f32.mrf.mxu1 }
 0x28e   : > { %v4747_v54 = vpop.f32.mrf.mxu0 }
 0x290   : > { %v4751_v56 = vpop.f32.mrf.mxu0 }
 0x296   : > { %v4755_v58 = vpop.f32.mrf.mxu0 }
 0x298   : > { %v4759_v60 = vpop.f32.mrf.mxu0 }
 0x29e   : > { %v4763_v51 = vpop.f32.mrf.mxu0 }
 0x2a0   : > { %v4765_v62 = vpop.f32.mrf.mxu0 }
 0x2a1   : > { %5011 = vst [vmem:[#allocation13_spill] sm:$0xff] %v4765_v62  ;;  %v1837_v62 = vadd.f32 %v3637_v40, %v3605_v41  ;;  %v1847_v40 = vadd.f32 %v4729_v44, %v4731_v45  ;;  %v1857_v44 = vadd.f32 %v4737_v48, %v4739_v49 }
 0x2a2   : > { %v3663_v1 = vpop.f32.mrf.mxu0 }
 0x2a3   : > { %v2088_v25 = vadd.f32 %v3663_v1, %v1817_v21  ;;  %v1832_v1 = vadd.f32 %v1831_v42, %v1638_v43  ;;  %v3710_v43 = vpop.f32.mrf.mxu1 }
 0x2a4   : > { %v2008_v3 = vpop.f32.mrf.mxu0 }
 0x2a5   : > { %v2087_v28 = vadd.f32 %v2008_v3, %v1812_v24  ;;  %v2301_v0 = vadd.f32 %v3695_v2, %v2088_v25 }
 0x2a6   : > { %v3666_v4 = vpop.f32.mrf.mxu0 }
 0x2a7   : > { %v2090_v31 = vadd.f32 %v3666_v4, %v1827_v27  ;;  %v2300_v35 = vadd.f32 %v2221_v5, %v2087_v28  ;;  %v2271_v28 = vpop.f32.mrf.mxu1 }
 0x2a8   : > { %v2018_v6 = vpop.f32.mrf.mxu0 }
 0x2a9   : > { %v2089_v33 = vadd.f32 %v2018_v6, %v1822_v63  ;;  %v2303_v38 = vadd.f32 %v3698_v7, %v2090_v31 }
 0x2aa   : > { %v3669_v8 = vpop.f32.mrf.mxu0 }
 0x2ab   : > { %v2092_v21 = vadd.f32 %v3669_v8, %v1837_v62  ;;  %v2302_v25 = vadd.f32 %v2231_v10, %v2089_v33 }
 0x2ac   : > { %v2028_v9 = vpop.f32.mrf.mxu0 }
 0x2ad   : > { %v2091_v39 = vadd.f32 %v2028_v9, %v1832_v1  ;;  %v2305_v42 = vadd.f32 %v3701_v12, %v2092_v21  ;;  %v1862_v21 = vadd.f32 %v4749_v55, %v4751_v56  ;;  %v1877_v55 = vadd.f32 %v4753_v57, %v4755_v58 }
 0x2ae   : > { %v3672_v11 = vpop.f32.mrf.mxu0 }
 0x2af   : > { %v2094_v5 = vadd.f32 %v3672_v11, %v1847_v40  ;;  %v2304_v45 = vadd.f32 %v2241_v15, %v2091_v39  ;;  %v1852_v11 = vadd.f32 %v4741_v50, %v4743_v52 }
 0x2b0   : > { %v2038_v13 = vpop.f32.mrf.mxu0 }
 0x2b1   : > { %v2307_v49 = vadd.f32 %v3704_v18, %v2094_v5 }
 0x2b2   : > { %v3675_v14 = vpop.f32.mrf.mxu0 }
 0x2b3   : > { %v2096_v27 = vadd.f32 %v3675_v14, %v1857_v44 }
 0x2b4   : > { %v4769_v16 = vpop.f32.mrf.mxu0 }
 0x2b5   : > { %v2095_v50 = vadd.f32 %v4769_v16, %v1852_v11 }
 0x2b6   : > { %v4771_v17 = vpop.f32.mrf.mxu0 }
 0x2b7   : > { %v2308_v56 = vadd.f32 %v2261_v36, %v2095_v50 }
 0x2b8   : > { %v4773_v19 = vpop.f32.mrf.mxu0 }
 0x2ba   : > { %v4775_v20 = vpop.f32.mrf.mxu0 }
 0x2bc   : > { %v4777_v23 = vpop.f32.mrf.mxu0 }
 0x2be   : > { %v4779_v26 = vpop.f32.mrf.mxu0 }
 0x2c0   : > { %v4781_v30 = vpop.f32.mrf.mxu0 }
 0x2c2   : > { %v3727_v61 = vpop.f32.mrf.mxu0 }
 0x2c3   : > { %v2514_v34 = vadd.f32 %v3727_v61, %v2301_v0  ;;  %v1842_v61 = vadd.f32 %v4733_v46, %v4735_v47 }
 0x2c4   : > { %v2434_v37 = vpop.f32.mrf.mxu0 }
 0x2c5   : > { %v2537_v3 = vadd.f32 %v4786_v32, %v2514_v34  ;;  %v2513_v24 = vadd.f32 %v2434_v37, %v2300_v35  ;;  %v2093_v10 = vadd.f32 %v2038_v13, %v1842_v61  ;;  %v1867_v34 = vadd.f32 %v4745_v53, %v4747_v54 }
 0x2c6   : > { %v3730_v2 = vpop.f32.mrf.mxu0  ;;  %v2309_v37 = vadd.f32 %v3707_v29, %v2096_v27 }
 0x2c7   : > { %v2536_v41 = vadd.f32 %v4786_v32, %v2513_v24  ;;  %v2516_v4 = vadd.f32 %v3730_v2, %v2303_v38  ;;  %v4794_v62 = vmax.f32 %v2537_v3, 0.0  ;;  %v2306_v14 = vadd.f32 %v2251_v22, %v2093_v10  ;;  %v3713_v3 = vpop.f32.mrf.mxu1  ;;  %v5015_v10 = vld [vmem:[#allocation14_spill] sm:$0xff] }
 0x2c8   : > { %v2444_v0 = vpop.f32.mrf.mxu0  ;;  %v2098_v24 = vadd.f32 %v4771_v17, %v1867_v34  ;;  %v2097_v2 = vadd.f32 %v4773_v19, %v1862_v21 }
 0x2c9   : > { %v4796_v6 = vmax.f32 %v2536_v41, 0.0  ;;  %v2539_v7 = vadd.f32 %v4786_v32, %v2516_v4  ;;  %v2515_v8 = vadd.f32 %v2444_v0, %v2302_v25  ;;  %v2569_v63 = vmul.f32 %v4794_v62, %v4794_v62  ;;  %v2281_v61 = vpop.f32.mrf.mxu1 }
 0x2ca   : > { %v3733_v9 = vpop.f32.mrf.mxu0  ;;  %v1872_v4 = vadd.f32 %v4757_v59, %v4759_v60  ;;  %v2100_v25 = vadd.f32 %v4775_v20, %v1877_v55 }
 0x2cb   : > { %v2568_v46 = vmul.f32 %v4796_v6, %v4796_v6  ;;  %v2538_v47 = vadd.f32 %v4786_v32, %v2515_v8  ;;  %v2518_v12 = vadd.f32 %v3733_v9, %v2305_v42  ;;  %v4808_v31 = vmax.f32 %v2539_v7, 0.0  ;;  %v5013_v7 = vld [vmem:[#allocation12_spill] sm:$0xff]  ;;  %v5014_v9 = vld [vmem:[#allocation13_spill] sm:$0xff] }
 0x2cc   : > { %v2454_v48 = vpop.f32.mrf.mxu0  ;;  %v2311_v42 = vadd.f32 %v3710_v43, %v2098_v24  ;;  %v1887_v59 = vadd.f32 %v5013_v7, %v4763_v51  ;;  %v2099_v60 = vadd.f32 %v4777_v23, %v1872_v4  ;;  %v2310_v8 = vadd.f32 %v2271_v28, %v2097_v2 }
 0x2cd   : > { %v4810_v15 = vmax.f32 %v2538_v47, 0.0  ;;  %v2541_v13 = vadd.f32 %v4786_v32, %v2518_v12  ;;  %v2517_v33 = vadd.f32 %v2454_v48, %v2304_v45  ;;  %3757 = vmatprep.mubr.msk.f32.mxu1 %vm1503_vm0, %v2568_v46  ;;  %v2571_v53 = vmul.f32 %v4808_v31, %v4808_v31  ;;  %v3716_v12 = vpop.f32.mrf.mxu1 }
 0x2ce   : > { %v3736_v52 = vpop.f32.mrf.mxu0  ;;  %3758 = vmatmul.mubr.msk.f32.vlgmr.msra.gmra.mxu1 %vm1503_vm0, %v2569_v63  ;;  %v1882_v46 = vadd.f32 %v5015_v10, %v5014_v9  ;;  %v2313_v47 = vadd.f32 %v3713_v3, %v2100_v25  ;;  %v2102_v27 = vadd.f32 %v4779_v26, %v1887_v59 }
 0x2cf   : > { %v2570_v35 = vmul.f32 %v4810_v15, %v4810_v15  ;;  %v2540_v18 = vadd.f32 %v4786_v32, %v2517_v33  ;;  %v2520_v1 = vadd.f32 %v3736_v52, %v2307_v49  ;;  %v4825_v54 = vmax.f32 %v2541_v13, 0.0  ;;  %v2291_v26 = vpop.f32.mrf.mxu1 }
 0x2d0   : > { %v2464_v16 = vpop.f32.mrf.mxu0  ;;  %v2312_v49 = vadd.f32 %v2281_v61, %v2099_v60  ;;  %v2101_v33 = vadd.f32 %v4781_v30, %v1882_v46 }
 0x2d1   : > { %v4828_v22 = vmax.f32 %v2540_v18, 0.0  ;;  %v2543_v38 = vadd.f32 %v4786_v32, %v2520_v1  ;;  %v2519_v39 = vadd.f32 %v2464_v16, %v2306_v14  ;;  %3760 = vmatprep.mubr.msk.f32.mxu1 %vm1503_vm0, %v2570_v35  ;;  %v2573_v57 = vmul.f32 %v4825_v54, %v4825_v54 }
 0x2d2   : > { %v3739_v29 = vpop.f32.mrf.mxu0  ;;  %3761 = vmatmul.mubr.msk.f32.gmra.mxu1 %vm1503_vm0, %v2571_v53  ;;  %v2315_v1 = vadd.f32 %v3716_v12, %v2102_v27  ;;  %v2314_v53 = vadd.f32 %v2291_v26, %v2101_v33 }
 0x2d3   : > { %v2572_v40 = vmul.f32 %v4828_v22, %v4828_v22  ;;  %v2542_v17 = vadd.f32 %v4786_v32, %v2519_v39  ;;  %v2522_v41 = vadd.f32 %v3739_v29, %v2309_v37  ;;  %v4844_v58 = vmax.f32 %v2543_v38, 0.0 }
 0x2d4   : > { %v2474_v36 = vpop.f32.mrf.mxu0 }
 0x2d5   : > { %v4846_v19 = vmax.f32 %v2542_v17, 0.0  ;;  %v2545_v0 = vadd.f32 %v4786_v32, %v2522_v41  ;;  %v2521_v5 = vadd.f32 %v2474_v36, %v2308_v56  ;;  %3763 = vmatprep.mubr.msk.f32.mxu1 %vm1503_vm0, %v2572_v40  ;;  %v2575_v51 = vmul.f32 %v4844_v58, %v4844_v58 }
 0x2d6   : > { %v3742_v20 = vpop.f32.mrf.mxu0  ;;  %3764 = vmatmul.mubr.msk.f32.gmra.mxu1 %vm1503_vm0, %v2573_v57 }
 0x2d7   : > { %v2574_v44 = vmul.f32 %v4846_v19, %v4846_v19  ;;  %v2544_v43 = vadd.f32 %v4786_v32, %v2521_v5  ;;  %v2524_v45 = vadd.f32 %v3742_v20, %v2311_v42  ;;  %v4861_v11 = vmax.f32 %v2545_v0, 0.0 }
 0x2d8   : > { %v2484_v23 = vpop.f32.mrf.mxu0 }
 0x2d9   : > { %v4864_v28 = vmax.f32 %v2544_v43, 0.0  ;;  %v2547_v63 = vadd.f32 %v4786_v32, %v2524_v45  ;;  %v2523_v48 = vadd.f32 %v2484_v23, %v2310_v8  ;;  %3766 = vmatprep.mubr.msk.f32.mxu1 %vm1503_vm0, %v2574_v44  ;;  %v2577_v14 = vmul.f32 %v4861_v11, %v4861_v11 }
 0x2da   : > { %v3745_v13 = vpop.f32.mrf.mxu0  ;;  %3767 = vmatmul.mubr.msk.f32.gmra.mxu1 %vm1503_vm0, %v2575_v51 }
 0x2db   : > { %v2576_v34 = vmul.f32 %v4864_v28, %v4864_v28  ;;  %v2546_v50 = vadd.f32 %v4786_v32, %v2523_v48  ;;  %v2526_v52 = vadd.f32 %v3745_v13, %v2313_v47  ;;  %v4875_v35 = vmax.f32 %v2547_v63, 0.0 }
 0x2dc   : > { %v2494_v18 = vpop.f32.mrf.mxu0 }
 0x2dd   : > { %v4877_v21 = vmax.f32 %v2546_v50, 0.0  ;;  %v2549_v37 = vadd.f32 %v4786_v32, %v2526_v52  ;;  %v2525_v3 = vadd.f32 %v2494_v18, %v2312_v49  ;;  %3769 = vmatprep.mubr.msk.f32.mxu1 %vm1503_vm0, %v2576_v34  ;;  %v2579_v39 = vmul.f32 %v4875_v35, %v4875_v35 }
 0x2de   : > { %v3748_v30 = vpop.f32.mrf.mxu0  ;;  %3770 = vmatmul.mubr.msk.f32.gmra.mxu1 %vm1503_vm0, %v2577_v14 }
 0x2df   : > { %v2578_v16 = vmul.f32 %v4877_v21, %v4877_v21  ;;  %v2548_v24 = vadd.f32 %v4786_v32, %v2525_v3  ;;  %v2528_v38 = vadd.f32 %v3748_v30, %v2315_v1  ;;  %v4887_v55 = vmax.f32 %v2549_v37, 0.0 }
 0x2e0   : > { %v2504_v56 = vpop.f32.mrf.mxu0 }
 0x2e1   : > { %v4889_v29 = vmax.f32 %v2548_v24, 0.0  ;;  %v2551_v2 = vadd.f32 %v4786_v32, %v2528_v38  ;;  %v2527_v40 = vadd.f32 %v2504_v56, %v2314_v53  ;;  %3772 = vmatprep.mubr.msk.f32.mxu1 %vm1503_vm0, %v2578_v16  ;;  %v2581_v4 = vmul.f32 %v4887_v55, %v4887_v55 }
 0x2e2   : > { %3773 = vmatmul.mubr.msk.f32.gmra.mxu1 %vm1503_vm0, %v2579_v39 }
 0x2e3   : > { %v2580_v17 = vmul.f32 %v4889_v29, %v4889_v29  ;;  %v2550_v41 = vadd.f32 %v4786_v32, %v2527_v40  ;;  %v4899_v25 = vmax.f32 %v2551_v2, 0.0 }
 0x2e5   : > { %v4901_v61 = vmax.f32 %v2550_v41, 0.0  ;;  %3775 = vmatprep.mubr.msk.f32.mxu1 %vm1503_vm0, %v2580_v17  ;;  %v2583_v36 = vmul.f32 %v4899_v25, %v4899_v25 }
 0x2e6   : > { %3776 = vmatmul.mubr.msk.f32.gmra.mxu1 %vm1503_vm0, %v2581_v4 }
 0x2e7   : > { %v2582_v57 = vmul.f32 %v4901_v61, %v4901_v61 }
 0x2e9   : > { %3778 = vmatprep.mubr.msk.f32.mxu1 %vm1503_vm0, %v2582_v57 }
 0x2ea   : > { %3779 = vmatmul.mubr.msk.f32.gmra.mxu1 %vm1503_vm0, %v2583_v36 }
 0x38e   : > { %v3759_v32 = vpop.f32.mrf.mxu1 }
 0x38f   : > { %v2782_v42 = vmax.f32 %v3759_v32, 1e-24 }
 0x390   : > { %v2702_v0 = vpop.f32.mrf.mxu1 }
 0x391   : > { %3930 = vrsqrt.f32 %v2782_v42  ;;  %v2781_v5 = vmax.f32 %v2702_v0, 1e-24 }
 0x392   : > { %v3762_v7 = vpop.f32.mrf.mxu1 }
 0x393   : > { %3932 = vrsqrt.f32 %v2781_v5  ;;  %v2784_v59 = vmax.f32 %v3762_v7, 1e-24 }
 0x394   : > { %v2712_v60 = vpop.f32.mrf.mxu1 }
 0x395   : > { %3934 = vrsqrt.f32 %v2784_v59  ;;  %v2783_v20 = vmax.f32 %v2712_v60, 1e-24 }
 0x396   : > { %v3765_v8 = vpop.f32.mrf.mxu1 }
 0x397   : > { %3936 = vrsqrt.f32 %v2783_v20  ;;  %v2786_v44 = vmax.f32 %v3765_v8, 1e-24 }
 0x398   : > { %v2722_v43 = vpop.f32.mrf.mxu1 }
 0x399   : > { %3938 = vrsqrt.f32 %v2786_v44  ;;  %v2785_v45 = vmax.f32 %v2722_v43, 1e-24 }
 0x39a   : > { %v3768_v9 = vpop.f32.mrf.mxu1 }
 0x39b   : > { %3940 = vrsqrt.f32 %v2785_v45  ;;  %v2788_v10 = vmax.f32 %v3768_v9, 1e-24 }
 0x39c   : > { %v2732_v46 = vpop.f32.mrf.mxu1 }
 0x39d   : > { %3942 = vrsqrt.f32 %v2788_v10  ;;  %v2787_v47 = vmax.f32 %v2732_v46, 1e-24 }
 0x39e   : > { %v3931_v12 = vpop.eup %3930  ;;  %v3771_v51 = vpop.f32.mrf.mxu1 }
 0x39f   : > { %v2814_v23 = vmul.f32 %v3931_v12, %v4794_v62  ;;  %3944 = vrsqrt.f32 %v2787_v47  ;;  %v2790_v27 = vmax.f32 %v3771_v51, 1e-24 }
 0x3a0   : > { %v3933_v63 = vpop.eup %3932  ;;  %v2742_v48 = vpop.f32.mrf.mxu1 }
 0x3a1   : > { %2830 = vst.msk [vmem:[%s4916_s9 + $0x8] sm:$0xff] %vm1503_vm0, %v2814_v23  ;;  %v2813_v49 = vmul.f32 %v3933_v63, %v4796_v6  ;;  %3946 = vrsqrt.f32 %v2790_v27  ;;  %v2789_v13 = vmax.f32 %v2742_v48, 1e-24 }
 0x3a2   : > { %v3935_v33 = vpop.eup %3934  ;;  %v3774_v34 = vpop.f32.mrf.mxu1 }
 0x3a3   : > { %2829 = vst.msk [vmem:[%s4916_s9] sm:$0xff] %vm1503_vm0, %v2813_v49  ;;  %v2816_v50 = vmul.f32 %v3935_v33, %v4808_v31  ;;  %3948 = vrsqrt.f32 %v2789_v13  ;;  %v2792_v62 = vmax.f32 %v3774_v34, 1e-24 }
 0x3a4   : > { %v3937_v52 = vpop.eup %3936  ;;  %v2752_v26 = vpop.f32.mrf.mxu1 }
 0x3a5   : > { %2832 = vst.msk [vmem:[%s4916_s9 + $0x18] sm:$0xff] %vm1503_vm0, %v2816_v50  ;;  %v2815_v14 = vmul.f32 %v3937_v52, %v4810_v15  ;;  %3950 = vrsqrt.f32 %v2792_v62  ;;  %v2791_v6 = vmax.f32 %v2752_v26, 1e-24 }
 0x3a6   : > { %v3939_v18 = vpop.eup %3938  ;;  %v3777_v1 = vpop.f32.mrf.mxu1 }
 0x3a7   : > { %2831 = vst.msk [vmem:[%s4916_s9 + $0x10] sm:$0xff] %vm1503_vm0, %v2815_v14  ;;  %v2818_v37 = vmul.f32 %v3939_v18, %v4825_v54  ;;  %3952 = vrsqrt.f32 %v2791_v6  ;;  %v2794_v31 = vmax.f32 %v3777_v1, 1e-24 }
 0x3a8   : > { %v3941_v3 = vpop.eup %3940  ;;  %v2762_v30 = vpop.f32.mrf.mxu1 }
 0x3a9   : > { %2834 = vst.msk [vmem:[%s4916_s9 + $0x28] sm:$0xff] %vm1503_vm0, %v2818_v37  ;;  %v2817_v53 = vmul.f32 %v3941_v3, %v4828_v22  ;;  %3954 = vrsqrt.f32 %v2794_v31  ;;  %v2793_v15 = vmax.f32 %v2762_v30, 1e-24 }
 0x3aa   : > { %v3943_v16 = vpop.eup %3942  ;;  %v3780_v24 = vpop.f32.mrf.mxu1 }
 0x3ab   : > { %2833 = vst.msk [vmem:[%s4916_s9 + $0x20] sm:$0xff] %vm1503_vm0, %v2817_v53  ;;  %v2820_v38 = vmul.f32 %v3943_v16, %v4844_v58  ;;  %3956 = vrsqrt.f32 %v2793_v15  ;;  %v2796_v54 = vmax.f32 %v3780_v24, 1e-24 }
 0x3ac   : > { %v3945_v39 = vpop.eup %3944  ;;  %v2772_v56 = vpop.f32.mrf.mxu1 }
 0x3ad   : > { %2836 = vst.msk [vmem:[%s4916_s9 + $0x38] sm:$0xff] %vm1503_vm0, %v2820_v38  ;;  %v2819_v22 = vmul.f32 %v3945_v39, %v4846_v19  ;;  %3958 = vrsqrt.f32 %v2796_v54  ;;  %v2795_v2 = vmax.f32 %v2772_v56, 1e-24 }
 0x3ae   : > { %v3947_v40 = vpop.eup %3946 }
 0x3af   : > { %2835 = vst.msk [vmem:[%s4916_s9 + $0x30] sm:$0xff] %vm1503_vm0, %v2819_v22  ;;  %v2822_v17 = vmul.f32 %v3947_v40, %v4861_v11  ;;  %3960 = vrsqrt.f32 %v2795_v2 }
 0x3b0   : > { %v3949_v58 = vpop.eup %3948 }
 0x3b1   : > { %2838 = vst.msk [vmem:[%s4916_s9 + $0x48] sm:$0xff] %vm1503_vm0, %v2822_v17  ;;  %v2821_v41 = vmul.f32 %v3949_v58, %v4864_v28 }
 0x3b2   : > { %v3951_v4 = vpop.eup %3950 }
 0x3b3   : > { %2837 = vst.msk [vmem:[%s4916_s9 + $0x40] sm:$0xff] %vm1503_vm0, %v2821_v41  ;;  %v2824_v19 = vmul.f32 %v3951_v4, %v4875_v35 }
 0x3b4   : > { %v3953_v57 = vpop.eup %3952 }
 0x3b5   : > { %2840 = vst.msk [vmem:[%s4916_s9 + $0x58] sm:$0xff] %vm1503_vm0, %v2824_v19  ;;  %v2823_v36 = vmul.f32 %v3953_v57, %v4877_v21 }
 0x3b6   : > { %v3955_v11 = vpop.eup %3954 }
 0x3b7   : > { %2839 = vst.msk [vmem:[%s4916_s9 + $0x50] sm:$0xff] %vm1503_vm0, %v2823_v36  ;;  %v2826_v32 = vmul.f32 %v3955_v11, %v4887_v55 }
 0x3b8   : > { %v3957_v42 = vpop.eup %3956 }
 0x3b9   : > { %2842 = vst.msk [vmem:[%s4916_s9 + $0x68] sm:$0xff] %vm1503_vm0, %v2826_v32  ;;  %v2825_v28 = vmul.f32 %v3957_v42, %v4889_v29 }
 0x3ba   : > { %v3959_v0 = vpop.eup %3958 }
 0x3bb   : > { %2841 = vst.msk [vmem:[%s4916_s9 + $0x60] sm:$0xff] %vm1503_vm0, %v2825_v28  ;;  %v2828_v35 = vmul.f32 %v3959_v0, %v4899_v25 }
 0x3bc   : > { %v3961_v5 = vpop.eup %3960 }
 0x3bd   : > { %2844 = vst.msk [vmem:[%s4916_s9 + $0x78] sm:$0xff] %vm1503_vm0, %v2828_v35  ;;  %v2827_v21 = vmul.f32 %v3961_v5, %v4901_v61 }
 0x3bf   : > { %2843 = vst.msk [vmem:[%s4916_s9 + $0x70] sm:$0xff] %vm1503_vm0, %v2827_v21 }
 0x3c0 PF: > { %s5017_s30 = sld [smem:[#allocation10_spill]]  ;;  %s5020_s27 = smov %s4076_s28 }
 0x3c1   : > { %s5018_s16 = sld [smem:[#allocation9_spill]] }
 0x3c2   : > { %s5019_s29 = sld [smem:[#allocation11_spill]] }
 0x3c6   : > { %p21_p4 = scmp.ge.s32.totalorder %s5017_s30, 4  }
 0x3c7   : > { %s5021_s28 = smov %s5018_s16 }
 0x3c8   :  { %23 = sbr.rel (!%p21_p4) target bundleno = 9 (0x9), region = 120 }
 0x3cd   :  { %2867 = vsyncpa [#allocation3], 1 }
 0x3ce   :  { %2869 = vsyncpa [#allocation3 + $0x1], 1 }
 0x3cf   :  { %2870 = vsyncpa [#allocation5], 1 }
 0x3d0   :  { %2872 = vsyncpa [#allocation5 + $0x1], 1 }

</bundles_post_ra>
